<compile_context>
chip_gen: v7x
topology: tpu7x:2x2x1
jax: 0.10.0
libtpu: 0.0.40
codegen_flags: <defaults>
</compile_context>

<pallas_src>
import functools

import jax
import jax.numpy as jnp
from jax.experimental import pallas as pl
from jax.experimental.pallas import tpu as pltpu

# ----------------------------- config --------------------------------------
VOCAB = 100
TYPE_VOCAB = 2
MAX_POS = 16
HIDDEN = 32
N_HEADS = 4
HEAD_DIM = HIDDEN // N_HEADS
INTERMEDIATE = 64
N_LAYERS = 2
N_CLASSES = 3
LN_EPS = 1e-12


# --------------------------- fused forward kernel ---------------------------
def _fused_bert_kernel(emb_ref, mask_ref, emb_g_ref, emb_b_ref,
                       qkv_w_ref, qkv_b_ref, o_w_ref, o_b_ref,
                       ln1_g_ref, ln1_b_ref, i_w_ref, i_b_ref,
                       f_w_ref, f_b_ref, ln2_g_ref, ln2_b_ref,
                       pool_w_ref, pool_b_ref, cls_w_ref, cls_b_ref,
                       out_ref, qkv_scr, ctx_scr,
                       *, n_layers, n_heads, head_dim, hidden, ln_eps):
    H = hidden

    def layernorm(y, g, b):
        mu = jnp.mean(y, axis=-1, keepdims=True)
        var = jnp.mean(jnp.square(y - mu), axis=-1, keepdims=True)
        return (y - mu) * jax.lax.rsqrt(var + ln_eps) * g + b

    def gelu_tanh(y):
        # TODO(synk): HF BERT uses exact erf-GELU; tanh approximation used here
        # (EUP-friendly, deviates by ~1e-3 per activation).
        c = 0.7978845608028654  # sqrt(2/pi)
        return 0.5 * y * (1.0 + jnp.tanh(c * (y + 0.044715 * y * y * y)))

    # Embedding LayerNorm (residual-free).
    h = layernorm(emb_ref[0], emb_g_ref[...], emb_b_ref[...])        # (S, H)

    # Additive attention bias built in-kernel from the (1, S) mask.
    bias = (1.0 - mask_ref[0]) * -1e9                                # (1, S)

    for l in range(n_layers):
        # ---- fused QKV projection (softmax scale folded into Q weights) ----
        qkv_scr[...] = (jnp.dot(h, qkv_w_ref[l],
                                preferred_element_type=jnp.float32)
                        + qkv_b_ref[l])                              # (S, 3H)

        # ---- per-head attention; heads merged back into ctx scratch --------
        for hd in range(n_heads):
            lo = hd * head_dim
            hi = lo + head_dim
            qh = qkv_scr[:, lo:hi]                                   # (S, Dh)
            kh = qkv_scr[:, H + lo:H + hi]                           # (S, Dh)
            vh = qkv_scr[:, 2 * H + lo:2 * H + hi]                   # (S, Dh)

            # scores = q @ k^T   (NT matmul, no explicit transpose op)
            s = jax.lax.dot_general(qh, kh, (((1,), (1,)), ((), ())),
                                    preferred_element_type=jnp.float32)
            s = s + bias                                             # (S, S)
            m = jnp.max(s, axis=-1, keepdims=True)
            p = jnp.exp(s - m)
            denom = jnp.sum(p, axis=-1, keepdims=True)               # >= 1
            p = p * pl.reciprocal(denom, approx=True)
            ctx_scr[:, lo:hi] = jnp.dot(p, vh,
                                        preferred_element_type=jnp.float32)

        # ---- attention output projection + Add & LayerNorm -----------------
        attn_out = (jnp.dot(ctx_scr[...], o_w_ref[l],
                            preferred_element_type=jnp.float32) + o_b_ref[l])
        h = layernorm(attn_out + h, ln1_g_ref[l], ln1_b_ref[l])

        # ---- FFN (GELU) + Add & LayerNorm -----------------------------------
        inter = gelu_tanh(jnp.dot(h, i_w_ref[l],
                                  preferred_element_type=jnp.float32)
                          + i_b_ref[l])
        ffn = (jnp.dot(inter, f_w_ref[l],
                       preferred_element_type=jnp.float32) + f_b_ref[l])
        h = layernorm(ffn + h, ln2_g_ref[l], ln2_b_ref[l])

    # ---- pooler (tanh dense on [CLS]) + classifier, fused in-kernel ---------
    cls = h[0:1, :]                                                  # (1, H)
    pooled = jnp.tanh(jnp.dot(cls, pool_w_ref[...],
                              preferred_element_type=jnp.float32)
                      + pool_b_ref[...])
    logits = (jnp.dot(pooled, cls_w_ref[...],
                      preferred_element_type=jnp.float32) + cls_b_ref[...])
    out_ref[0] = logits.astype(out_ref.dtype)                        # (1, C)


# ----------------------------- parameters ----------------------------------
def init_params(key):
    def dense(k, fan_in, fan_out):
        kw, _ = jax.random.split(k)
        w = 0.02 * jax.random.normal(kw, (fan_in, fan_out), jnp.float32)
        b = jnp.zeros((fan_out,), jnp.float32)
        return w, b

    keys = jax.random.split(key, 8 + 12 * N_LAYERS)
    it = iter(keys)
    p = {}
    p["word_emb"] = 0.02 * jax.random.normal(next(it), (VOCAB, HIDDEN), jnp.float32)
    p["pos_emb"] = 0.02 * jax.random.normal(next(it), (MAX_POS, HIDDEN), jnp.float32)
    p["type_emb"] = 0.02 * jax.random.normal(next(it), (TYPE_VOCAB, HIDDEN), jnp.float32)
    p["emb_ln_g"] = jnp.ones((HIDDEN,), jnp.float32)
    p["emb_ln_b"] = jnp.zeros((HIDDEN,), jnp.float32)

    layers = []
    for _ in range(N_LAYERS):
        lp = {}
        lp["q_w"], lp["q_b"] = dense(next(it), HIDDEN, HIDDEN)
        lp["k_w"], lp["k_b"] = dense(next(it), HIDDEN, HIDDEN)
        lp["v_w"], lp["v_b"] = dense(next(it), HIDDEN, HIDDEN)
        lp["o_w"], lp["o_b"] = dense(next(it), HIDDEN, HIDDEN)
        lp["ln1_g"] = jnp.ones((HIDDEN,), jnp.float32)
        lp["ln1_b"] = jnp.zeros((HIDDEN,), jnp.float32)
        lp["i_w"], lp["i_b"] = dense(next(it), HIDDEN, INTERMEDIATE)
        lp["f_w"], lp["f_b"] = dense(next(it), INTERMEDIATE, HIDDEN)
        lp["ln2_g"] = jnp.ones((HIDDEN,), jnp.float32)
        lp["ln2_b"] = jnp.zeros((HIDDEN,), jnp.float32)
        layers.append(lp)
    p["layers"] = layers

    p["pool_w"], p["pool_b"] = dense(next(it), HIDDEN, HIDDEN)
    p["cls_w"], p["cls_b"] = dense(next(it), HIDDEN, N_CLASSES)
    return p


def pack_params(p):
    """Stack per-layer weights as (L, ...) and fold the softmax scale into Q."""
    scale = 1.0 / (HEAD_DIM ** 0.5)
    layers = p["layers"]

    def stack(fn):
        return jnp.stack([fn(lp) for lp in layers], axis=0)

    return dict(
        qkv_w=stack(lambda lp: jnp.concatenate(
            [lp["q_w"] * scale, lp["k_w"], lp["v_w"]], axis=1)),        # (L,H,3H)
        qkv_b=stack(lambda lp: jnp.concatenate(
            [lp["q_b"] * scale, lp["k_b"], lp["v_b"]])[None, :]),       # (L,1,3H)
        o_w=stack(lambda lp: lp["o_w"]),
        o_b=stack(lambda lp: lp["o_b"][None, :]),
        ln1_g=stack(lambda lp: lp["ln1_g"][None, :]),
        ln1_b=stack(lambda lp: lp["ln1_b"][None, :]),
        i_w=stack(lambda lp: lp["i_w"]),
        i_b=stack(lambda lp: lp["i_b"][None, :]),
        f_w=stack(lambda lp: lp["f_w"]),
        f_b=stack(lambda lp: lp["f_b"][None, :]),
        ln2_g=stack(lambda lp: lp["ln2_g"][None, :]),
        ln2_b=stack(lambda lp: lp["ln2_b"][None, :]),
    )


# ----------------------------- forward pass ---------------------------------
def custom_bert_forward(params, input_ids, attention_mask):
    B, S = input_ids.shape
    packed = pack_params(params)

    # Embedding gathers (plain-JAX glue); token_type_ids fixed to zero.
    positions = jnp.arange(S)
    emb = (params["word_emb"][input_ids]
           + params["pos_emb"][positions][None, :, :]
           + params["type_emb"][0][None, None, :])                   # (B, S, H)
    mask = attention_mask.astype(jnp.float32).reshape(B, 1, S)       # (B, 1, S)

    def full(shape):
        return pl.BlockSpec(shape, lambda b, _n=len(shape): (0,) * _n)

    def per_example(shape):
        return pl.BlockSpec(shape, lambda b, _n=len(shape): (b,) + (0,) * (_n - 1))

    in_specs = [
        per_example((1, S, HIDDEN)),               # emb
        per_example((1, 1, S)),                    # mask
        full((1, HIDDEN)),                         # emb_ln_g
        full((1, HIDDEN)),                         # emb_ln_b
        full((N_LAYERS, HIDDEN, 3 * HIDDEN)),      # qkv_w
        full((N_LAYERS, 1, 3 * HIDDEN)),           # qkv_b
        full((N_LAYERS, HIDDEN, HIDDEN)),          # o_w
        full((N_LAYERS, 1, HIDDEN)),               # o_b
        full((N_LAYERS, 1, HIDDEN)),               # ln1_g
        full((N_LAYERS, 1, HIDDEN)),               # ln1_b
        full((N_LAYERS, HIDDEN, INTERMEDIATE)),    # i_w
        full((N_LAYERS, 1, INTERMEDIATE)),         # i_b
        full((N_LAYERS, INTERMEDIATE, HIDDEN)),    # f_w
        full((N_LAYERS, 1, HIDDEN)),               # f_b
        full((N_LAYERS, 1, HIDDEN)),               # ln2_g
        full((N_LAYERS, 1, HIDDEN)),               # ln2_b
        full((HIDDEN, HIDDEN)),                    # pool_w
        full((1, HIDDEN)),                         # pool_b
        full((HIDDEN, N_CLASSES)),                 # cls_w
        full((1, N_CLASSES)),                      # cls_b
    ]

    logits3 = pl.pallas_call(
        functools.partial(_fused_bert_kernel, n_layers=N_LAYERS,
                          n_heads=N_HEADS, head_dim=HEAD_DIM,
                          hidden=HIDDEN, ln_eps=LN_EPS),
        out_shape=jax.ShapeDtypeStruct((B, 1, N_CLASSES), jnp.float32),
        grid=(B,),
        in_specs=in_specs,
        out_specs=pl.BlockSpec((1, 1, N_CLASSES), lambda b: (b, 0, 0)),
        scratch_shapes=[pltpu.VMEM((S, 3 * HIDDEN), jnp.float32),   # qkv
                        pltpu.VMEM((S, HIDDEN), jnp.float32)],      # ctx
        compiler_params=pltpu.CompilerParams(
            dimension_semantics=("parallel",)),
    )(emb, mask,
      params["emb_ln_g"][None, :], params["emb_ln_b"][None, :],
      packed["qkv_w"], packed["qkv_b"], packed["o_w"], packed["o_b"],
      packed["ln1_g"], packed["ln1_b"], packed["i_w"], packed["i_b"],
      packed["f_w"], packed["f_b"], packed["ln2_g"], packed["ln2_b"],
      params["pool_w"], params["pool_b"][None, :],
      params["cls_w"], params["cls_b"][None, :])

    return logits3.reshape(B, N_CLASSES)


# --------------------------------- main --------------------------------------
if __name__ == "__main__":
    key = jax.random.PRNGKey(0)
    k_param, k_ids = jax.random.split(key)

    B, S = 2, 8
    params = init_params(k_param)
    input_ids = jax.random.randint(k_ids, (B, S), 0, VOCAB, dtype=jnp.int32)
    attention_mask = jnp.array(
        [[1, 1, 1, 1, 1, 1, 1, 1],
         [1, 1, 1, 1, 1, 0, 0, 0]], dtype=jnp.int32)

    logits = custom_bert_forward(params, input_ids, attention_mask)
    logits = jax.block_until_ready(logits)
    assert logits.shape == (B, N_CLASSES) and logits.dtype == jnp.float32
    print("KERNEL_OK")
</pallas_src>

<mosaic_0001>
module attributes {stable_mosaic.version = 11 : i64} {
  func.func @_fused_bert_kernel(%arg0: i32, %arg1: memref<1x8x32xf32, #tpu.memory_space<vmem>>, %arg2: memref<1x1x8xf32, #tpu.memory_space<vmem>>, %arg3: memref<1x32xf32, #tpu.memory_space<vmem>>, %arg4: memref<1x32xf32, #tpu.memory_space<vmem>>, %arg5: memref<2x32x96xf32, #tpu.memory_space<vmem>>, %arg6: memref<2x1x96xf32, #tpu.memory_space<vmem>>, %arg7: memref<2x32x32xf32, #tpu.memory_space<vmem>>, %arg8: memref<2x1x32xf32, #tpu.memory_space<vmem>>, %arg9: memref<2x1x32xf32, #tpu.memory_space<vmem>>, %arg10: memref<2x1x32xf32, #tpu.memory_space<vmem>>, %arg11: memref<2x32x64xf32, #tpu.memory_space<vmem>>, %arg12: memref<2x1x64xf32, #tpu.memory_space<vmem>>, %arg13: memref<2x64x32xf32, #tpu.memory_space<vmem>>, %arg14: memref<2x1x32xf32, #tpu.memory_space<vmem>>, %arg15: memref<2x1x32xf32, #tpu.memory_space<vmem>>, %arg16: memref<2x1x32xf32, #tpu.memory_space<vmem>>, %arg17: memref<32x32xf32, #tpu.memory_space<vmem>>, %arg18: memref<1x32xf32, #tpu.memory_space<vmem>>, %arg19: memref<32x3xf32, #tpu.memory_space<vmem>>, %arg20: memref<1x3xf32, #tpu.memory_space<vmem>>, %arg21: memref<1x1x3xf32, #tpu.memory_space<vmem>>, %arg22: memref<8x96xf32, #tpu.memory_space<vmem>>, %arg23: memref<8x32xf32, #tpu.memory_space<vmem>>) attributes {dimension_semantics = [#tpu.dimension_semantics<parallel>], iteration_bounds = array<i64: 2>, scalar_prefetch = 0 : i64, scratch_operands = 2 : i64, tpu.core_type = #tpu.core_type<tc>, window_params = [{transform_indices = @transform_0, window_bounds = array<i64: 1, 8, 32>}, {transform_indices = @transform_1, window_bounds = array<i64: 1, 1, 8>}, {pipeline_mode = #tpu.pipeline_mode<synchronous>, transform_indices = @transform_2, window_bounds = array<i64: 1, 32>}, {pipeline_mode = #tpu.pipeline_mode<synchronous>, transform_indices = @transform_3, window_bounds = array<i64: 1, 32>}, {pipeline_mode = #tpu.pipeline_mode<synchronous>, transform_indices = @transform_4, window_bounds = array<i64: 2, 32, 96>}, {pipeline_mode = #tpu.pipeline_mode<synchronous>, transform_indices = @transform_5, window_bounds = array<i64: 2, 1, 96>}, {pipeline_mode = #tpu.pipeline_mode<synchronous>, transform_indices = @transform_6, window_bounds = array<i64: 2, 32, 32>}, {pipeline_mode = #tpu.pipeline_mode<synchronous>, transform_indices = @transform_7, window_bounds = array<i64: 2, 1, 32>}, {pipeline_mode = #tpu.pipeline_mode<synchronous>, transform_indices = @transform_8, window_bounds = array<i64: 2, 1, 32>}, {pipeline_mode = #tpu.pipeline_mode<synchronous>, transform_indices = @transform_9, window_bounds = array<i64: 2, 1, 32>}, {pipeline_mode = #tpu.pipeline_mode<synchronous>, transform_indices = @transform_10, window_bounds = array<i64: 2, 32, 64>}, {pipeline_mode = #tpu.pipeline_mode<synchronous>, transform_indices = @transform_11, window_bounds = array<i64: 2, 1, 64>}, {pipeline_mode = #tpu.pipeline_mode<synchronous>, transform_indices = @transform_12, window_bounds = array<i64: 2, 64, 32>}, {pipeline_mode = #tpu.pipeline_mode<synchronous>, transform_indices = @transform_13, window_bounds = array<i64: 2, 1, 32>}, {pipeline_mode = #tpu.pipeline_mode<synchronous>, transform_indices = @transform_14, window_bounds = array<i64: 2, 1, 32>}, {pipeline_mode = #tpu.pipeline_mode<synchronous>, transform_indices = @transform_15, window_bounds = array<i64: 2, 1, 32>}, {pipeline_mode = #tpu.pipeline_mode<synchronous>, transform_indices = @transform_16, window_bounds = array<i64: 32, 32>}, {pipeline_mode = #tpu.pipeline_mode<synchronous>, transform_indices = @transform_17, window_bounds = array<i64: 1, 32>}, {pipeline_mode = #tpu.pipeline_mode<synchronous>, transform_indices = @transform_18, window_bounds = array<i64: 32, 3>}, {pipeline_mode = #tpu.pipeline_mode<synchronous>, transform_indices = @transform_19, window_bounds = array<i64: 1, 3>}, {transform_indices = @transform_20, window_bounds = array<i64: 1, 1, 3>}]} {
    %c0 = arith.constant 0 : index
    %c0_0 = arith.constant 0 : index
    %c0_1 = arith.constant 0 : index
    %0 = vector.load %arg1[%c0, %c0_0, %c0_1] : memref<1x8x32xf32, #tpu.memory_space<vmem>>, vector<1x8x32xf32>
    %1 = vector.shape_cast %0 : vector<1x8x32xf32> to vector<8x32xf32>
    %c0_2 = arith.constant 0 : index
    %c0_3 = arith.constant 0 : index
    %2 = vector.load %arg3[%c0_2, %c0_3] : memref<1x32xf32, #tpu.memory_space<vmem>>, vector<1x32xf32>
    %c0_4 = arith.constant 0 : index
    %c0_5 = arith.constant 0 : index
    %3 = vector.load %arg4[%c0_4, %c0_5] : memref<1x32xf32, #tpu.memory_space<vmem>>, vector<1x32xf32>
    %cst = arith.constant dense<0.000000e+00> : vector<8xf32>
    %4 = vector.multi_reduction <add>, %1, %cst [1] : vector<8x32xf32> to vector<8xf32>
    %5 = vector.shape_cast %4 : vector<8xf32> to vector<8x1xf32>
    %cst_6 = arith.constant 3.200000e+01 : f32
    %6 = vector.broadcast %cst_6 : f32 to vector<8x1xf32>
    %7 = arith.divf %5, %6 : vector<8x1xf32>
    %8 = vector.broadcast %7 : vector<8x1xf32> to vector<8x32xf32>
    %9 = arith.subf %1, %8 : vector<8x32xf32>
    %10 = arith.mulf %9, %9 : vector<8x32xf32>
    %cst_7 = arith.constant dense<0.000000e+00> : vector<8xf32>
    %11 = vector.multi_reduction <add>, %10, %cst_7 [1] : vector<8x32xf32> to vector<8xf32>
    %12 = vector.shape_cast %11 : vector<8xf32> to vector<8x1xf32>
    %cst_8 = arith.constant 3.200000e+01 : f32
    %13 = vector.broadcast %cst_8 : f32 to vector<8x1xf32>
    %14 = arith.divf %12, %13 : vector<8x1xf32>
    %15 = vector.broadcast %7 : vector<8x1xf32> to vector<8x32xf32>
    %16 = arith.subf %1, %15 : vector<8x32xf32>
    %cst_9 = arith.constant 9.99999996E-13 : f32
    %17 = vector.broadcast %cst_9 : f32 to vector<8x1xf32>
    %18 = arith.addf %14, %17 : vector<8x1xf32>
    %19 = math.rsqrt %18 : vector<8x1xf32>
    %20 = vector.broadcast %19 : vector<8x1xf32> to vector<8x32xf32>
    %21 = arith.mulf %16, %20 : vector<8x32xf32>
    %22 = vector.broadcast %2 : vector<1x32xf32> to vector<8x32xf32>
    %23 = arith.mulf %21, %22 : vector<8x32xf32>
    %24 = vector.broadcast %3 : vector<1x32xf32> to vector<8x32xf32>
    %25 = arith.addf %23, %24 : vector<8x32xf32>
    %c0_10 = arith.constant 0 : index
    %c0_11 = arith.constant 0 : index
    %c0_12 = arith.constant 0 : index
    %26 = vector.load %arg2[%c0_10, %c0_11, %c0_12] : memref<1x1x8xf32, #tpu.memory_space<vmem>>, vector<1x1x8xf32>
    %27 = vector.shape_cast %26 : vector<1x1x8xf32> to vector<1x8xf32>
    %cst_13 = arith.constant 1.000000e+00 : f32
    %28 = vector.broadcast %cst_13 : f32 to vector<1x8xf32>
    %29 = arith.subf %28, %27 : vector<1x8xf32>
    %cst_14 = arith.constant -1.000000e+09 : f32
    %30 = vector.broadcast %cst_14 : f32 to vector<1x8xf32>
    %31 = arith.mulf %29, %30 : vector<1x8xf32>
    %c0_15 = arith.constant 0 : index
    %c0_16 = arith.constant 0 : index
    %c0_17 = arith.constant 0 : index
    %32 = vector.load %arg5[%c0_15, %c0_16, %c0_17] : memref<2x32x96xf32, #tpu.memory_space<vmem>>, vector<1x32x96xf32>
    %33 = vector.shape_cast %32 : vector<1x32x96xf32> to vector<32x96xf32>
    %cst_18 = arith.constant dense<0.000000e+00> : vector<8x96xf32>
    %34 = tpu.matmul %25, %33, %cst_18 {dimension_numbers = #tpu.dot_dimension_numbers<[1], [0], [0], [1], [0, 0, 1, 1], [], []>} : vector<8x32xf32>, vector<32x96xf32>, vector<8x96xf32> -> vector<8x96xf32>
    %c0_19 = arith.constant 0 : index
    %c0_20 = arith.constant 0 : index
    %c0_21 = arith.constant 0 : index
    %35 = vector.load %arg6[%c0_19, %c0_20, %c0_21] : memref<2x1x96xf32, #tpu.memory_space<vmem>>, vector<1x1x96xf32>
    %36 = vector.shape_cast %35 : vector<1x1x96xf32> to vector<1x96xf32>
    %37 = vector.broadcast %36 : vector<1x96xf32> to vector<8x96xf32>
    %38 = arith.addf %34, %37 : vector<8x96xf32>
    %c0_22 = arith.constant 0 : index
    %c0_23 = arith.constant 0 : index
    %39 = vector.load %arg22[%c0_22, %c0_23] : memref<8x96xf32, #tpu.memory_space<vmem>>, vector<8x96xf32>
    tpu.vector_store %arg22[%c0_22, %c0_23], %38 {strides = array<i32>} : memref<8x96xf32, #tpu.memory_space<vmem>>, vector<8x96xf32>,
    %c0_24 = arith.constant 0 : index
    %c0_25 = arith.constant 0 : index
    %40 = vector.load %arg22[%c0_24, %c0_25] : memref<8x96xf32, #tpu.memory_space<vmem>>, vector<8x8xf32>
    %c0_26 = arith.constant 0 : index
    %c32 = arith.constant 32 : index
    %41 = vector.load %arg22[%c0_26, %c32] : memref<8x96xf32, #tpu.memory_space<vmem>>, vector<8x8xf32>
    %c0_27 = arith.constant 0 : index
    %c64 = arith.constant 64 : index
    %42 = vector.load %arg22[%c0_27, %c64] : memref<8x96xf32, #tpu.memory_space<vmem>>, vector<8x8xf32>
    %cst_28 = arith.constant dense<0.000000e+00> : vector<8x8xf32>
    %43 = tpu.matmul %40, %41, %cst_28 {dimension_numbers = #tpu.dot_dimension_numbers<[1], [1], [0], [0], [0, 0, 1, 0], [], []>} : vector<8x8xf32>, vector<8x8xf32>, vector<8x8xf32> -> vector<8x8xf32>
    %44 = vector.broadcast %31 : vector<1x8xf32> to vector<8x8xf32>
    %45 = arith.addf %43, %44 : vector<8x8xf32>
    %cst_29 = arith.constant dense<0xFF800000> : vector<8xf32>
    %46 = vector.multi_reduction <maximumf>, %45, %cst_29 [1] : vector<8x8xf32> to vector<8xf32>
    %47 = vector.shape_cast %46 : vector<8xf32> to vector<8x1xf32>
    %48 = vector.broadcast %47 : vector<8x1xf32> to vector<8x8xf32>
    %49 = arith.subf %45, %48 : vector<8x8xf32>
    %50 = math.exp %49 : vector<8x8xf32>
    %cst_30 = arith.constant dense<0.000000e+00> : vector<8xf32>
    %51 = vector.multi_reduction <add>, %50, %cst_30 [1] : vector<8x8xf32> to vector<8xf32>
    %52 = vector.shape_cast %51 : vector<8xf32> to vector<8x1xf32>
    %53 = tpu.reciprocal %52 {approx = true} : vector<8x1xf32> -> vector<8x1xf32>
    %54 = vector.broadcast %53 : vector<8x1xf32> to vector<8x8xf32>
    %55 = arith.mulf %50, %54 : vector<8x8xf32>
    %cst_31 = arith.constant dense<0.000000e+00> : vector<8x8xf32>
    %56 = tpu.matmul %55, %42, %cst_31 {dimension_numbers = #tpu.dot_dimension_numbers<[1], [0], [0], [1], [0, 0, 1, 1], [], []>} : vector<8x8xf32>, vector<8x8xf32>, vector<8x8xf32> -> vector<8x8xf32>
    %c0_32 = arith.constant 0 : index
    %c0_33 = arith.constant 0 : index
    %57 = vector.load %arg23[%c0_32, %c0_33] : memref<8x32xf32, #tpu.memory_space<vmem>>, vector<8x8xf32>
    tpu.vector_store %arg23[%c0_32, %c0_33], %56 {strides = array<i32>} : memref<8x32xf32, #tpu.memory_space<vmem>>, vector<8x8xf32>,
    %c0_34 = arith.constant 0 : index
    %c8 = arith.constant 8 : index
    %58 = vector.load %arg22[%c0_34, %c8] : memref<8x96xf32, #tpu.memory_space<vmem>>, vector<8x8xf32>
    %c0_35 = arith.constant 0 : index
    %c40 = arith.constant 40 : index
    %59 = vector.load %arg22[%c0_35, %c40] : memref<8x96xf32, #tpu.memory_space<vmem>>, vector<8x8xf32>
    %c0_36 = arith.constant 0 : index
    %c72 = arith.constant 72 : index
    %60 = vector.load %arg22[%c0_36, %c72] : memref<8x96xf32, #tpu.memory_space<vmem>>, vector<8x8xf32>
    %cst_37 = arith.constant dense<0.000000e+00> : vector<8x8xf32>
    %61 = tpu.matmul %58, %59, %cst_37 {dimension_numbers = #tpu.dot_dimension_numbers<[1], [1], [0], [0], [0, 0, 1, 0], [], []>} : vector<8x8xf32>, vector<8x8xf32>, vector<8x8xf32> -> vector<8x8xf32>
    %62 = vector.broadcast %31 : vector<1x8xf32> to vector<8x8xf32>
    %63 = arith.addf %61, %62 : vector<8x8xf32>
    %cst_38 = arith.constant dense<0xFF800000> : vector<8xf32>
    %64 = vector.multi_reduction <maximumf>, %63, %cst_38 [1] : vector<8x8xf32> to vector<8xf32>
    %65 = vector.shape_cast %64 : vector<8xf32> to vector<8x1xf32>
    %66 = vector.broadcast %65 : vector<8x1xf32> to vector<8x8xf32>
    %67 = arith.subf %63, %66 : vector<8x8xf32>
    %68 = math.exp %67 : vector<8x8xf32>
    %cst_39 = arith.constant dense<0.000000e+00> : vector<8xf32>
    %69 = vector.multi_reduction <add>, %68, %cst_39 [1] : vector<8x8xf32> to vector<8xf32>
    %70 = vector.shape_cast %69 : vector<8xf32> to vector<8x1xf32>
    %71 = tpu.reciprocal %70 {approx = true} : vector<8x1xf32> -> vector<8x1xf32>
    %72 = vector.broadcast %71 : vector<8x1xf32> to vector<8x8xf32>
    %73 = arith.mulf %68, %72 : vector<8x8xf32>
    %cst_40 = arith.constant dense<0.000000e+00> : vector<8x8xf32>
    %74 = tpu.matmul %73, %60, %cst_40 {dimension_numbers = #tpu.dot_dimension_numbers<[1], [0], [0], [1], [0, 0, 1, 1], [], []>} : vector<8x8xf32>, vector<8x8xf32>, vector<8x8xf32> -> vector<8x8xf32>
    %c0_41 = arith.constant 0 : index
    %c8_42 = arith.constant 8 : index
    %75 = vector.load %arg23[%c0_41, %c8_42] : memref<8x32xf32, #tpu.memory_space<vmem>>, vector<8x8xf32>
    tpu.vector_store %arg23[%c0_41, %c8_42], %74 {strides = array<i32>} : memref<8x32xf32, #tpu.memory_space<vmem>>, vector<8x8xf32>,
    %c0_43 = arith.constant 0 : index
    %c16 = arith.constant 16 : index
    %76 = vector.load %arg22[%c0_43, %c16] : memref<8x96xf32, #tpu.memory_space<vmem>>, vector<8x8xf32>
    %c0_44 = arith.constant 0 : index
    %c48 = arith.constant 48 : index
    %77 = vector.load %arg22[%c0_44, %c48] : memref<8x96xf32, #tpu.memory_space<vmem>>, vector<8x8xf32>
    %c0_45 = arith.constant 0 : index
    %c80 = arith.constant 80 : index
    %78 = vector.load %arg22[%c0_45, %c80] : memref<8x96xf32, #tpu.memory_space<vmem>>, vector<8x8xf32>
    %cst_46 = arith.constant dense<0.000000e+00> : vector<8x8xf32>
    %79 = tpu.matmul %76, %77, %cst_46 {dimension_numbers = #tpu.dot_dimension_numbers<[1], [1], [0], [0], [0, 0, 1, 0], [], []>} : vector<8x8xf32>, vector<8x8xf32>, vector<8x8xf32> -> vector<8x8xf32>
    %80 = vector.broadcast %31 : vector<1x8xf32> to vector<8x8xf32>
    %81 = arith.addf %79, %80 : vector<8x8xf32>
    %cst_47 = arith.constant dense<0xFF800000> : vector<8xf32>
    %82 = vector.multi_reduction <maximumf>, %81, %cst_47 [1] : vector<8x8xf32> to vector<8xf32>
    %83 = vector.shape_cast %82 : vector<8xf32> to vector<8x1xf32>
    %84 = vector.broadcast %83 : vector<8x1xf32> to vector<8x8xf32>
    %85 = arith.subf %81, %84 : vector<8x8xf32>
    %86 = math.exp %85 : vector<8x8xf32>
    %cst_48 = arith.constant dense<0.000000e+00> : vector<8xf32>
    %87 = vector.multi_reduction <add>, %86, %cst_48 [1] : vector<8x8xf32> to vector<8xf32>
    %88 = vector.shape_cast %87 : vector<8xf32> to vector<8x1xf32>
    %89 = tpu.reciprocal %88 {approx = true} : vector<8x1xf32> -> vector<8x1xf32>
    %90 = vector.broadcast %89 : vector<8x1xf32> to vector<8x8xf32>
    %91 = arith.mulf %86, %90 : vector<8x8xf32>
    %cst_49 = arith.constant dense<0.000000e+00> : vector<8x8xf32>
    %92 = tpu.matmul %91, %78, %cst_49 {dimension_numbers = #tpu.dot_dimension_numbers<[1], [0], [0], [1], [0, 0, 1, 1], [], []>} : vector<8x8xf32>, vector<8x8xf32>, vector<8x8xf32> -> vector<8x8xf32>
    %c0_50 = arith.constant 0 : index
    %c16_51 = arith.constant 16 : index
    %93 = vector.load %arg23[%c0_50, %c16_51] : memref<8x32xf32, #tpu.memory_space<vmem>>, vector<8x8xf32>
    tpu.vector_store %arg23[%c0_50, %c16_51], %92 {strides = array<i32>} : memref<8x32xf32, #tpu.memory_space<vmem>>, vector<8x8xf32>,
    %c0_52 = arith.constant 0 : index
    %c24 = arith.constant 24 : index
    %94 = vector.load %arg22[%c0_52, %c24] : memref<8x96xf32, #tpu.memory_space<vmem>>, vector<8x8xf32>
    %c0_53 = arith.constant 0 : index
    %c56 = arith.constant 56 : index
    %95 = vector.load %arg22[%c0_53, %c56] : memref<8x96xf32, #tpu.memory_space<vmem>>, vector<8x8xf32>
    %c0_54 = arith.constant 0 : index
    %c88 = arith.constant 88 : index
    %96 = vector.load %arg22[%c0_54, %c88] : memref<8x96xf32, #tpu.memory_space<vmem>>, vector<8x8xf32>
    %cst_55 = arith.constant dense<0.000000e+00> : vector<8x8xf32>
    %97 = tpu.matmul %94, %95, %cst_55 {dimension_numbers = #tpu.dot_dimension_numbers<[1], [1], [0], [0], [0, 0, 1, 0], [], []>} : vector<8x8xf32>, vector<8x8xf32>, vector<8x8xf32> -> vector<8x8xf32>
    %98 = vector.broadcast %31 : vector<1x8xf32> to vector<8x8xf32>
    %99 = arith.addf %97, %98 : vector<8x8xf32>
    %cst_56 = arith.constant dense<0xFF800000> : vector<8xf32>
    %100 = vector.multi_reduction <maximumf>, %99, %cst_56 [1] : vector<8x8xf32> to vector<8xf32>
    %101 = vector.shape_cast %100 : vector<8xf32> to vector<8x1xf32>
    %102 = vector.broadcast %101 : vector<8x1xf32> to vector<8x8xf32>
    %103 = arith.subf %99, %102 : vector<8x8xf32>
    %104 = math.exp %103 : vector<8x8xf32>
    %cst_57 = arith.constant dense<0.000000e+00> : vector<8xf32>
    %105 = vector.multi_reduction <add>, %104, %cst_57 [1] : vector<8x8xf32> to vector<8xf32>
    %106 = vector.shape_cast %105 : vector<8xf32> to vector<8x1xf32>
    %107 = tpu.reciprocal %106 {approx = true} : vector<8x1xf32> -> vector<8x1xf32>
    %108 = vector.broadcast %107 : vector<8x1xf32> to vector<8x8xf32>
    %109 = arith.mulf %104, %108 : vector<8x8xf32>
    %cst_58 = arith.constant dense<0.000000e+00> : vector<8x8xf32>
    %110 = tpu.matmul %109, %96, %cst_58 {dimension_numbers = #tpu.dot_dimension_numbers<[1], [0], [0], [1], [0, 0, 1, 1], [], []>} : vector<8x8xf32>, vector<8x8xf32>, vector<8x8xf32> -> vector<8x8xf32>
    %c0_59 = arith.constant 0 : index
    %c24_60 = arith.constant 24 : index
    %111 = vector.load %arg23[%c0_59, %c24_60] : memref<8x32xf32, #tpu.memory_space<vmem>>, vector<8x8xf32>
    tpu.vector_store %arg23[%c0_59, %c24_60], %110 {strides = array<i32>} : memref<8x32xf32, #tpu.memory_space<vmem>>, vector<8x8xf32>,
    %c0_61 = arith.constant 0 : index
    %c0_62 = arith.constant 0 : index
    %112 = vector.load %arg23[%c0_61, %c0_62] : memref<8x32xf32, #tpu.memory_space<vmem>>, vector<8x32xf32>
    %c0_63 = arith.constant 0 : index
    %c0_64 = arith.constant 0 : index
    %c0_65 = arith.constant 0 : index
    %113 = vector.load %arg7[%c0_63, %c0_64, %c0_65] : memref<2x32x32xf32, #tpu.memory_space<vmem>>, vector<1x32x32xf32>
    %114 = vector.shape_cast %113 : vector<1x32x32xf32> to vector<32x32xf32>
    %cst_66 = arith.constant dense<0.000000e+00> : vector<8x32xf32>
    %115 = tpu.matmul %112, %114, %cst_66 {dimension_numbers = #tpu.dot_dimension_numbers<[1], [0], [0], [1], [0, 0, 1, 1], [], []>} : vector<8x32xf32>, vector<32x32xf32>, vector<8x32xf32> -> vector<8x32xf32>
    %c0_67 = arith.constant 0 : index
    %c0_68 = arith.constant 0 : index
    %c0_69 = arith.constant 0 : index
    %116 = vector.load %arg8[%c0_67, %c0_68, %c0_69] : memref<2x1x32xf32, #tpu.memory_space<vmem>>, vector<1x1x32xf32>
    %117 = vector.shape_cast %116 : vector<1x1x32xf32> to vector<1x32xf32>
    %118 = vector.broadcast %117 : vector<1x32xf32> to vector<8x32xf32>
    %119 = arith.addf %115, %118 : vector<8x32xf32>
    %120 = arith.addf %119, %25 : vector<8x32xf32>
    %c0_70 = arith.constant 0 : index
    %c0_71 = arith.constant 0 : index
    %c0_72 = arith.constant 0 : index
    %121 = vector.load %arg9[%c0_70, %c0_71, %c0_72] : memref<2x1x32xf32, #tpu.memory_space<vmem>>, vector<1x1x32xf32>
    %122 = vector.shape_cast %121 : vector<1x1x32xf32> to vector<1x32xf32>
    %c0_73 = arith.constant 0 : index
    %c0_74 = arith.constant 0 : index
    %c0_75 = arith.constant 0 : index
    %123 = vector.load %arg10[%c0_73, %c0_74, %c0_75] : memref<2x1x32xf32, #tpu.memory_space<vmem>>, vector<1x1x32xf32>
    %124 = vector.shape_cast %123 : vector<1x1x32xf32> to vector<1x32xf32>
    %cst_76 = arith.constant dense<0.000000e+00> : vector<8xf32>
    %125 = vector.multi_reduction <add>, %120, %cst_76 [1] : vector<8x32xf32> to vector<8xf32>
    %126 = vector.shape_cast %125 : vector<8xf32> to vector<8x1xf32>
    %cst_77 = arith.constant 3.200000e+01 : f32
    %127 = vector.broadcast %cst_77 : f32 to vector<8x1xf32>
    %128 = arith.divf %126, %127 : vector<8x1xf32>
    %129 = vector.broadcast %128 : vector<8x1xf32> to vector<8x32xf32>
    %130 = arith.subf %120, %129 : vector<8x32xf32>
    %131 = arith.mulf %130, %130 : vector<8x32xf32>
    %cst_78 = arith.constant dense<0.000000e+00> : vector<8xf32>
    %132 = vector.multi_reduction <add>, %131, %cst_78 [1] : vector<8x32xf32> to vector<8xf32>
    %133 = vector.shape_cast %132 : vector<8xf32> to vector<8x1xf32>
    %cst_79 = arith.constant 3.200000e+01 : f32
    %134 = vector.broadcast %cst_79 : f32 to vector<8x1xf32>
    %135 = arith.divf %133, %134 : vector<8x1xf32>
    %136 = vector.broadcast %128 : vector<8x1xf32> to vector<8x32xf32>
    %137 = arith.subf %120, %136 : vector<8x32xf32>
    %cst_80 = arith.constant 9.99999996E-13 : f32
    %138 = vector.broadcast %cst_80 : f32 to vector<8x1xf32>
    %139 = arith.addf %135, %138 : vector<8x1xf32>
    %140 = math.rsqrt %139 : vector<8x1xf32>
    %141 = vector.broadcast %140 : vector<8x1xf32> to vector<8x32xf32>
    %142 = arith.mulf %137, %141 : vector<8x32xf32>
    %143 = vector.broadcast %122 : vector<1x32xf32> to vector<8x32xf32>
    %144 = arith.mulf %142, %143 : vector<8x32xf32>
    %145 = vector.broadcast %124 : vector<1x32xf32> to vector<8x32xf32>
    %146 = arith.addf %144, %145 : vector<8x32xf32>
    %c0_81 = arith.constant 0 : index
    %c0_82 = arith.constant 0 : index
    %c0_83 = arith.constant 0 : index
    %147 = vector.load %arg11[%c0_81, %c0_82, %c0_83] : memref<2x32x64xf32, #tpu.memory_space<vmem>>, vector<1x32x64xf32>
    %148 = vector.shape_cast %147 : vector<1x32x64xf32> to vector<32x64xf32>
    %cst_84 = arith.constant dense<0.000000e+00> : vector<8x64xf32>
    %149 = tpu.matmul %146, %148, %cst_84 {dimension_numbers = #tpu.dot_dimension_numbers<[1], [0], [0], [1], [0, 0, 1, 1], [], []>} : vector<8x32xf32>, vector<32x64xf32>, vector<8x64xf32> -> vector<8x64xf32>
    %c0_85 = arith.constant 0 : index
    %c0_86 = arith.constant 0 : index
    %c0_87 = arith.constant 0 : index
    %150 = vector.load %arg12[%c0_85, %c0_86, %c0_87] : memref<2x1x64xf32, #tpu.memory_space<vmem>>, vector<1x1x64xf32>
    %151 = vector.shape_cast %150 : vector<1x1x64xf32> to vector<1x64xf32>
    %152 = vector.broadcast %151 : vector<1x64xf32> to vector<8x64xf32>
    %153 = arith.addf %149, %152 : vector<8x64xf32>
    %cst_88 = arith.constant 5.000000e-01 : f32
    %154 = vector.broadcast %cst_88 : f32 to vector<8x64xf32>
    %155 = arith.mulf %154, %153 : vector<8x64xf32>
    %cst_89 = arith.constant 4.471500e-02 : f32
    %156 = vector.broadcast %cst_89 : f32 to vector<8x64xf32>
    %157 = arith.mulf %156, %153 : vector<8x64xf32>
    %158 = arith.mulf %157, %153 : vector<8x64xf32>
    %159 = arith.mulf %158, %153 : vector<8x64xf32>
    %160 = arith.addf %153, %159 : vector<8x64xf32>
    %cst_90 = arith.constant 0.797884583 : f32
    %161 = vector.broadcast %cst_90 : f32 to vector<8x64xf32>
    %162 = arith.mulf %161, %160 : vector<8x64xf32>
    %163 = math.tanh %162 : vector<8x64xf32>
    %cst_91 = arith.constant 1.000000e+00 : f32
    %164 = vector.broadcast %cst_91 : f32 to vector<8x64xf32>
    %165 = arith.addf %164, %163 : vector<8x64xf32>
    %166 = arith.mulf %155, %165 : vector<8x64xf32>
    %c0_92 = arith.constant 0 : index
    %c0_93 = arith.constant 0 : index
    %c0_94 = arith.constant 0 : index
    %167 = vector.load %arg13[%c0_92, %c0_93, %c0_94] : memref<2x64x32xf32, #tpu.memory_space<vmem>>, vector<1x64x32xf32>
    %168 = vector.shape_cast %167 : vector<1x64x32xf32> to vector<64x32xf32>
    %cst_95 = arith.constant dense<0.000000e+00> : vector<8x32xf32>
    %169 = tpu.matmul %166, %168, %cst_95 {dimension_numbers = #tpu.dot_dimension_numbers<[1], [0], [0], [1], [0, 0, 1, 1], [], []>} : vector<8x64xf32>, vector<64x32xf32>, vector<8x32xf32> -> vector<8x32xf32>
    %c0_96 = arith.constant 0 : index
    %c0_97 = arith.constant 0 : index
    %c0_98 = arith.constant 0 : index
    %170 = vector.load %arg14[%c0_96, %c0_97, %c0_98] : memref<2x1x32xf32, #tpu.memory_space<vmem>>, vector<1x1x32xf32>
    %171 = vector.shape_cast %170 : vector<1x1x32xf32> to vector<1x32xf32>
    %172 = vector.broadcast %171 : vector<1x32xf32> to vector<8x32xf32>
    %173 = arith.addf %169, %172 : vector<8x32xf32>
    %174 = arith.addf %173, %146 : vector<8x32xf32>
    %c0_99 = arith.constant 0 : index
    %c0_100 = arith.constant 0 : index
    %c0_101 = arith.constant 0 : index
    %175 = vector.load %arg15[%c0_99, %c0_100, %c0_101] : memref<2x1x32xf32, #tpu.memory_space<vmem>>, vector<1x1x32xf32>
    %176 = vector.shape_cast %175 : vector<1x1x32xf32> to vector<1x32xf32>
    %c0_102 = arith.constant 0 : index
    %c0_103 = arith.constant 0 : index
    %c0_104 = arith.constant 0 : index
    %177 = vector.load %arg16[%c0_102, %c0_103, %c0_104] : memref<2x1x32xf32, #tpu.memory_space<vmem>>, vector<1x1x32xf32>
    %178 = vector.shape_cast %177 : vector<1x1x32xf32> to vector<1x32xf32>
    %cst_105 = arith.constant dense<0.000000e+00> : vector<8xf32>
    %179 = vector.multi_reduction <add>, %174, %cst_105 [1] : vector<8x32xf32> to vector<8xf32>
    %180 = vector.shape_cast %179 : vector<8xf32> to vector<8x1xf32>
    %cst_106 = arith.constant 3.200000e+01 : f32
    %181 = vector.broadcast %cst_106 : f32 to vector<8x1xf32>
    %182 = arith.divf %180, %181 : vector<8x1xf32>
    %183 = vector.broadcast %182 : vector<8x1xf32> to vector<8x32xf32>
    %184 = arith.subf %174, %183 : vector<8x32xf32>
    %185 = arith.mulf %184, %184 : vector<8x32xf32>
    %cst_107 = arith.constant dense<0.000000e+00> : vector<8xf32>
    %186 = vector.multi_reduction <add>, %185, %cst_107 [1] : vector<8x32xf32> to vector<8xf32>
    %187 = vector.shape_cast %186 : vector<8xf32> to vector<8x1xf32>
    %cst_108 = arith.constant 3.200000e+01 : f32
    %188 = vector.broadcast %cst_108 : f32 to vector<8x1xf32>
    %189 = arith.divf %187, %188 : vector<8x1xf32>
    %190 = vector.broadcast %182 : vector<8x1xf32> to vector<8x32xf32>
    %191 = arith.subf %174, %190 : vector<8x32xf32>
    %cst_109 = arith.constant 9.99999996E-13 : f32
    %192 = vector.broadcast %cst_109 : f32 to vector<8x1xf32>
    %193 = arith.addf %189, %192 : vector<8x1xf32>
    %194 = math.rsqrt %193 : vector<8x1xf32>
    %195 = vector.broadcast %194 : vector<8x1xf32> to vector<8x32xf32>
    %196 = arith.mulf %191, %195 : vector<8x32xf32>
    %197 = vector.broadcast %176 : vector<1x32xf32> to vector<8x32xf32>
    %198 = arith.mulf %196, %197 : vector<8x32xf32>
    %199 = vector.broadcast %178 : vector<1x32xf32> to vector<8x32xf32>
    %200 = arith.addf %198, %199 : vector<8x32xf32>
    %c1 = arith.constant 1 : index
    %c0_110 = arith.constant 0 : index
    %c0_111 = arith.constant 0 : index
    %201 = vector.load %arg5[%c1, %c0_110, %c0_111] : memref<2x32x96xf32, #tpu.memory_space<vmem>>, vector<1x32x96xf32>
    %202 = vector.shape_cast %201 : vector<1x32x96xf32> to vector<32x96xf32>
    %cst_112 = arith.constant dense<0.000000e+00> : vector<8x96xf32>
    %203 = tpu.matmul %200, %202, %cst_112 {dimension_numbers = #tpu.dot_dimension_numbers<[1], [0], [0], [1], [0, 0, 1, 1], [], []>} : vector<8x32xf32>, vector<32x96xf32>, vector<8x96xf32> -> vector<8x96xf32>
    %c1_113 = arith.constant 1 : index
    %c0_114 = arith.constant 0 : index
    %c0_115 = arith.constant 0 : index
    %204 = vector.load %arg6[%c1_113, %c0_114, %c0_115] : memref<2x1x96xf32, #tpu.memory_space<vmem>>, vector<1x1x96xf32>
    %205 = vector.shape_cast %204 : vector<1x1x96xf32> to vector<1x96xf32>
    %206 = vector.broadcast %205 : vector<1x96xf32> to vector<8x96xf32>
    %207 = arith.addf %203, %206 : vector<8x96xf32>
    %c0_116 = arith.constant 0 : index
    %c0_117 = arith.constant 0 : index
    %208 = vector.load %arg22[%c0_116, %c0_117] : memref<8x96xf32, #tpu.memory_space<vmem>>, vector<8x96xf32>
    tpu.vector_store %arg22[%c0_116, %c0_117], %207 {strides = array<i32>} : memref<8x96xf32, #tpu.memory_space<vmem>>, vector<8x96xf32>,
    %c0_118 = arith.constant 0 : index
    %c0_119 = arith.constant 0 : index
    %209 = vector.load %arg22[%c0_118, %c0_119] : memref<8x96xf32, #tpu.memory_space<vmem>>, vector<8x8xf32>
    %c0_120 = arith.constant 0 : index
    %c32_121 = arith.constant 32 : index
    %210 = vector.load %arg22[%c0_120, %c32_121] : memref<8x96xf32, #tpu.memory_space<vmem>>, vector<8x8xf32>
    %c0_122 = arith.constant 0 : index
    %c64_123 = arith.constant 64 : index
    %211 = vector.load %arg22[%c0_122, %c64_123] : memref<8x96xf32, #tpu.memory_space<vmem>>, vector<8x8xf32>
    %cst_124 = arith.constant dense<0.000000e+00> : vector<8x8xf32>
    %212 = tpu.matmul %209, %210, %cst_124 {dimension_numbers = #tpu.dot_dimension_numbers<[1], [1], [0], [0], [0, 0, 1, 0], [], []>} : vector<8x8xf32>, vector<8x8xf32>, vector<8x8xf32> -> vector<8x8xf32>
    %213 = vector.broadcast %31 : vector<1x8xf32> to vector<8x8xf32>
    %214 = arith.addf %212, %213 : vector<8x8xf32>
    %cst_125 = arith.constant dense<0xFF800000> : vector<8xf32>
    %215 = vector.multi_reduction <maximumf>, %214, %cst_125 [1] : vector<8x8xf32> to vector<8xf32>
    %216 = vector.shape_cast %215 : vector<8xf32> to vector<8x1xf32>
    %217 = vector.broadcast %216 : vector<8x1xf32> to vector<8x8xf32>
    %218 = arith.subf %214, %217 : vector<8x8xf32>
    %219 = math.exp %218 : vector<8x8xf32>
    %cst_126 = arith.constant dense<0.000000e+00> : vector<8xf32>
    %220 = vector.multi_reduction <add>, %219, %cst_126 [1] : vector<8x8xf32> to vector<8xf32>
    %221 = vector.shape_cast %220 : vector<8xf32> to vector<8x1xf32>
    %222 = tpu.reciprocal %221 {approx = true} : vector<8x1xf32> -> vector<8x1xf32>
    %223 = vector.broadcast %222 : vector<8x1xf32> to vector<8x8xf32>
    %224 = arith.mulf %219, %223 : vector<8x8xf32>
    %cst_127 = arith.constant dense<0.000000e+00> : vector<8x8xf32>
    %225 = tpu.matmul %224, %211, %cst_127 {dimension_numbers = #tpu.dot_dimension_numbers<[1], [0], [0], [1], [0, 0, 1, 1], [], []>} : vector<8x8xf32>, vector<8x8xf32>, vector<8x8xf32> -> vector<8x8xf32>
    %c0_128 = arith.constant 0 : index
    %c0_129 = arith.constant 0 : index
    %226 = vector.load %arg23[%c0_128, %c0_129] : memref<8x32xf32, #tpu.memory_space<vmem>>, vector<8x8xf32>
    tpu.vector_store %arg23[%c0_128, %c0_129], %225 {strides = array<i32>} : memref<8x32xf32, #tpu.memory_space<vmem>>, vector<8x8xf32>,
    %c0_130 = arith.constant 0 : index
    %c8_131 = arith.constant 8 : index
    %227 = vector.load %arg22[%c0_130, %c8_131] : memref<8x96xf32, #tpu.memory_space<vmem>>, vector<8x8xf32>
    %c0_132 = arith.constant 0 : index
    %c40_133 = arith.constant 40 : index
    %228 = vector.load %arg22[%c0_132, %c40_133] : memref<8x96xf32, #tpu.memory_space<vmem>>, vector<8x8xf32>
    %c0_134 = arith.constant 0 : index
    %c72_135 = arith.constant 72 : index
    %229 = vector.load %arg22[%c0_134, %c72_135] : memref<8x96xf32, #tpu.memory_space<vmem>>, vector<8x8xf32>
    %cst_136 = arith.constant dense<0.000000e+00> : vector<8x8xf32>
    %230 = tpu.matmul %227, %228, %cst_136 {dimension_numbers = #tpu.dot_dimension_numbers<[1], [1], [0], [0], [0, 0, 1, 0], [], []>} : vector<8x8xf32>, vector<8x8xf32>, vector<8x8xf32> -> vector<8x8xf32>
    %231 = vector.broadcast %31 : vector<1x8xf32> to vector<8x8xf32>
    %232 = arith.addf %230, %231 : vector<8x8xf32>
    %cst_137 = arith.constant dense<0xFF800000> : vector<8xf32>
    %233 = vector.multi_reduction <maximumf>, %232, %cst_137 [1] : vector<8x8xf32> to vector<8xf32>
    %234 = vector.shape_cast %233 : vector<8xf32> to vector<8x1xf32>
    %235 = vector.broadcast %234 : vector<8x1xf32> to vector<8x8xf32>
    %236 = arith.subf %232, %235 : vector<8x8xf32>
    %237 = math.exp %236 : vector<8x8xf32>
    %cst_138 = arith.constant dense<0.000000e+00> : vector<8xf32>
    %238 = vector.multi_reduction <add>, %237, %cst_138 [1] : vector<8x8xf32> to vector<8xf32>
    %239 = vector.shape_cast %238 : vector<8xf32> to vector<8x1xf32>
    %240 = tpu.reciprocal %239 {approx = true} : vector<8x1xf32> -> vector<8x1xf32>
    %241 = vector.broadcast %240 : vector<8x1xf32> to vector<8x8xf32>
    %242 = arith.mulf %237, %241 : vector<8x8xf32>
    %cst_139 = arith.constant dense<0.000000e+00> : vector<8x8xf32>
    %243 = tpu.matmul %242, %229, %cst_139 {dimension_numbers = #tpu.dot_dimension_numbers<[1], [0], [0], [1], [0, 0, 1, 1], [], []>} : vector<8x8xf32>, vector<8x8xf32>, vector<8x8xf32> -> vector<8x8xf32>
    %c0_140 = arith.constant 0 : index
    %c8_141 = arith.constant 8 : index
    %244 = vector.load %arg23[%c0_140, %c8_141] : memref<8x32xf32, #tpu.memory_space<vmem>>, vector<8x8xf32>
    tpu.vector_store %arg23[%c0_140, %c8_141], %243 {strides = array<i32>} : memref<8x32xf32, #tpu.memory_space<vmem>>, vector<8x8xf32>,
    %c0_142 = arith.constant 0 : index
    %c16_143 = arith.constant 16 : index
    %245 = vector.load %arg22[%c0_142, %c16_143] : memref<8x96xf32, #tpu.memory_space<vmem>>, vector<8x8xf32>
    %c0_144 = arith.constant 0 : index
    %c48_145 = arith.constant 48 : index
    %246 = vector.load %arg22[%c0_144, %c48_145] : memref<8x96xf32, #tpu.memory_space<vmem>>, vector<8x8xf32>
    %c0_146 = arith.constant 0 : index
    %c80_147 = arith.constant 80 : index
    %247 = vector.load %arg22[%c0_146, %c80_147] : memref<8x96xf32, #tpu.memory_space<vmem>>, vector<8x8xf32>
    %cst_148 = arith.constant dense<0.000000e+00> : vector<8x8xf32>
    %248 = tpu.matmul %245, %246, %cst_148 {dimension_numbers = #tpu.dot_dimension_numbers<[1], [1], [0], [0], [0, 0, 1, 0], [], []>} : vector<8x8xf32>, vector<8x8xf32>, vector<8x8xf32> -> vector<8x8xf32>
    %249 = vector.broadcast %31 : vector<1x8xf32> to vector<8x8xf32>
    %250 = arith.addf %248, %249 : vector<8x8xf32>
    %cst_149 = arith.constant dense<0xFF800000> : vector<8xf32>
    %251 = vector.multi_reduction <maximumf>, %250, %cst_149 [1] : vector<8x8xf32> to vector<8xf32>
    %252 = vector.shape_cast %251 : vector<8xf32> to vector<8x1xf32>
    %253 = vector.broadcast %252 : vector<8x1xf32> to vector<8x8xf32>
    %254 = arith.subf %250, %253 : vector<8x8xf32>
    %255 = math.exp %254 : vector<8x8xf32>
    %cst_150 = arith.constant dense<0.000000e+00> : vector<8xf32>
    %256 = vector.multi_reduction <add>, %255, %cst_150 [1] : vector<8x8xf32> to vector<8xf32>
    %257 = vector.shape_cast %256 : vector<8xf32> to vector<8x1xf32>
    %258 = tpu.reciprocal %257 {approx = true} : vector<8x1xf32> -> vector<8x1xf32>
    %259 = vector.broadcast %258 : vector<8x1xf32> to vector<8x8xf32>
    %260 = arith.mulf %255, %259 : vector<8x8xf32>
    %cst_151 = arith.constant dense<0.000000e+00> : vector<8x8xf32>
    %261 = tpu.matmul %260, %247, %cst_151 {dimension_numbers = #tpu.dot_dimension_numbers<[1], [0], [0], [1], [0, 0, 1, 1], [], []>} : vector<8x8xf32>, vector<8x8xf32>, vector<8x8xf32> -> vector<8x8xf32>
    %c0_152 = arith.constant 0 : index
    %c16_153 = arith.constant 16 : index
    %262 = vector.load %arg23[%c0_152, %c16_153] : memref<8x32xf32, #tpu.memory_space<vmem>>, vector<8x8xf32>
    tpu.vector_store %arg23[%c0_152, %c16_153], %261 {strides = array<i32>} : memref<8x32xf32, #tpu.memory_space<vmem>>, vector<8x8xf32>,
    %c0_154 = arith.constant 0 : index
    %c24_155 = arith.constant 24 : index
    %263 = vector.load %arg22[%c0_154, %c24_155] : memref<8x96xf32, #tpu.memory_space<vmem>>, vector<8x8xf32>
    %c0_156 = arith.constant 0 : index
    %c56_157 = arith.constant 56 : index
    %264 = vector.load %arg22[%c0_156, %c56_157] : memref<8x96xf32, #tpu.memory_space<vmem>>, vector<8x8xf32>
    %c0_158 = arith.constant 0 : index
    %c88_159 = arith.constant 88 : index
    %265 = vector.load %arg22[%c0_158, %c88_159] : memref<8x96xf32, #tpu.memory_space<vmem>>, vector<8x8xf32>
    %cst_160 = arith.constant dense<0.000000e+00> : vector<8x8xf32>
    %266 = tpu.matmul %263, %264, %cst_160 {dimension_numbers = #tpu.dot_dimension_numbers<[1], [1], [0], [0], [0, 0, 1, 0], [], []>} : vector<8x8xf32>, vector<8x8xf32>, vector<8x8xf32> -> vector<8x8xf32>
    %267 = vector.broadcast %31 : vector<1x8xf32> to vector<8x8xf32>
    %268 = arith.addf %266, %267 : vector<8x8xf32>
    %cst_161 = arith.constant dense<0xFF800000> : vector<8xf32>
    %269 = vector.multi_reduction <maximumf>, %268, %cst_161 [1] : vector<8x8xf32> to vector<8xf32>
    %270 = vector.shape_cast %269 : vector<8xf32> to vector<8x1xf32>
    %271 = vector.broadcast %270 : vector<8x1xf32> to vector<8x8xf32>
    %272 = arith.subf %268, %271 : vector<8x8xf32>
    %273 = math.exp %272 : vector<8x8xf32>
    %cst_162 = arith.constant dense<0.000000e+00> : vector<8xf32>
    %274 = vector.multi_reduction <add>, %273, %cst_162 [1] : vector<8x8xf32> to vector<8xf32>
    %275 = vector.shape_cast %274 : vector<8xf32> to vector<8x1xf32>
    %276 = tpu.reciprocal %275 {approx = true} : vector<8x1xf32> -> vector<8x1xf32>
    %277 = vector.broadcast %276 : vector<8x1xf32> to vector<8x8xf32>
    %278 = arith.mulf %273, %277 : vector<8x8xf32>
    %cst_163 = arith.constant dense<0.000000e+00> : vector<8x8xf32>
    %279 = tpu.matmul %278, %265, %cst_163 {dimension_numbers = #tpu.dot_dimension_numbers<[1], [0], [0], [1], [0, 0, 1, 1], [], []>} : vector<8x8xf32>, vector<8x8xf32>, vector<8x8xf32> -> vector<8x8xf32>
    %c0_164 = arith.constant 0 : index
    %c24_165 = arith.constant 24 : index
    %280 = vector.load %arg23[%c0_164, %c24_165] : memref<8x32xf32, #tpu.memory_space<vmem>>, vector<8x8xf32>
    tpu.vector_store %arg23[%c0_164, %c24_165], %279 {strides = array<i32>} : memref<8x32xf32, #tpu.memory_space<vmem>>, vector<8x8xf32>,
    %c0_166 = arith.constant 0 : index
    %c0_167 = arith.constant 0 : index
    %281 = vector.load %arg23[%c0_166, %c0_167] : memref<8x32xf32, #tpu.memory_space<vmem>>, vector<8x32xf32>
    %c1_168 = arith.constant 1 : index
    %c0_169 = arith.constant 0 : index
    %c0_170 = arith.constant 0 : index
    %282 = vector.load %arg7[%c1_168, %c0_169, %c0_170] : memref<2x32x32xf32, #tpu.memory_space<vmem>>, vector<1x32x32xf32>
    %283 = vector.shape_cast %282 : vector<1x32x32xf32> to vector<32x32xf32>
    %cst_171 = arith.constant dense<0.000000e+00> : vector<8x32xf32>
    %284 = tpu.matmul %281, %283, %cst_171 {dimension_numbers = #tpu.dot_dimension_numbers<[1], [0], [0], [1], [0, 0, 1, 1], [], []>} : vector<8x32xf32>, vector<32x32xf32>, vector<8x32xf32> -> vector<8x32xf32>
    %c1_172 = arith.constant 1 : index
    %c0_173 = arith.constant 0 : index
    %c0_174 = arith.constant 0 : index
    %285 = vector.load %arg8[%c1_172, %c0_173, %c0_174] : memref<2x1x32xf32, #tpu.memory_space<vmem>>, vector<1x1x32xf32>
    %286 = vector.shape_cast %285 : vector<1x1x32xf32> to vector<1x32xf32>
    %287 = vector.broadcast %286 : vector<1x32xf32> to vector<8x32xf32>
    %288 = arith.addf %284, %287 : vector<8x32xf32>
    %289 = arith.addf %288, %200 : vector<8x32xf32>
    %c1_175 = arith.constant 1 : index
    %c0_176 = arith.constant 0 : index
    %c0_177 = arith.constant 0 : index
    %290 = vector.load %arg9[%c1_175, %c0_176, %c0_177] : memref<2x1x32xf32, #tpu.memory_space<vmem>>, vector<1x1x32xf32>
    %291 = vector.shape_cast %290 : vector<1x1x32xf32> to vector<1x32xf32>
    %c1_178 = arith.constant 1 : index
    %c0_179 = arith.constant 0 : index
    %c0_180 = arith.constant 0 : index
    %292 = vector.load %arg10[%c1_178, %c0_179, %c0_180] : memref<2x1x32xf32, #tpu.memory_space<vmem>>, vector<1x1x32xf32>
    %293 = vector.shape_cast %292 : vector<1x1x32xf32> to vector<1x32xf32>
    %cst_181 = arith.constant dense<0.000000e+00> : vector<8xf32>
    %294 = vector.multi_reduction <add>, %289, %cst_181 [1] : vector<8x32xf32> to vector<8xf32>
    %295 = vector.shape_cast %294 : vector<8xf32> to vector<8x1xf32>
    %cst_182 = arith.constant 3.200000e+01 : f32
    %296 = vector.broadcast %cst_182 : f32 to vector<8x1xf32>
    %297 = arith.divf %295, %296 : vector<8x1xf32>
    %298 = vector.broadcast %297 : vector<8x1xf32> to vector<8x32xf32>
    %299 = arith.subf %289, %298 : vector<8x32xf32>
    %300 = arith.mulf %299, %299 : vector<8x32xf32>
    %cst_183 = arith.constant dense<0.000000e+00> : vector<8xf32>
    %301 = vector.multi_reduction <add>, %300, %cst_183 [1] : vector<8x32xf32> to vector<8xf32>
    %302 = vector.shape_cast %301 : vector<8xf32> to vector<8x1xf32>
    %cst_184 = arith.constant 3.200000e+01 : f32
    %303 = vector.broadcast %cst_184 : f32 to vector<8x1xf32>
    %304 = arith.divf %302, %303 : vector<8x1xf32>
    %305 = vector.broadcast %297 : vector<8x1xf32> to vector<8x32xf32>
    %306 = arith.subf %289, %305 : vector<8x32xf32>
    %cst_185 = arith.constant 9.99999996E-13 : f32
    %307 = vector.broadcast %cst_185 : f32 to vector<8x1xf32>
    %308 = arith.addf %304, %307 : vector<8x1xf32>
    %309 = math.rsqrt %308 : vector<8x1xf32>
    %310 = vector.broadcast %309 : vector<8x1xf32> to vector<8x32xf32>
    %311 = arith.mulf %306, %310 : vector<8x32xf32>
    %312 = vector.broadcast %291 : vector<1x32xf32> to vector<8x32xf32>
    %313 = arith.mulf %311, %312 : vector<8x32xf32>
    %314 = vector.broadcast %293 : vector<1x32xf32> to vector<8x32xf32>
    %315 = arith.addf %313, %314 : vector<8x32xf32>
    %c1_186 = arith.constant 1 : index
    %c0_187 = arith.constant 0 : index
    %c0_188 = arith.constant 0 : index
    %316 = vector.load %arg11[%c1_186, %c0_187, %c0_188] : memref<2x32x64xf32, #tpu.memory_space<vmem>>, vector<1x32x64xf32>
    %317 = vector.shape_cast %316 : vector<1x32x64xf32> to vector<32x64xf32>
    %cst_189 = arith.constant dense<0.000000e+00> : vector<8x64xf32>
    %318 = tpu.matmul %315, %317, %cst_189 {dimension_numbers = #tpu.dot_dimension_numbers<[1], [0], [0], [1], [0, 0, 1, 1], [], []>} : vector<8x32xf32>, vector<32x64xf32>, vector<8x64xf32> -> vector<8x64xf32>
    %c1_190 = arith.constant 1 : index
    %c0_191 = arith.constant 0 : index
    %c0_192 = arith.constant 0 : index
    %319 = vector.load %arg12[%c1_190, %c0_191, %c0_192] : memref<2x1x64xf32, #tpu.memory_space<vmem>>, vector<1x1x64xf32>
    %320 = vector.shape_cast %319 : vector<1x1x64xf32> to vector<1x64xf32>
    %321 = vector.broadcast %320 : vector<1x64xf32> to vector<8x64xf32>
    %322 = arith.addf %318, %321 : vector<8x64xf32>
    %cst_193 = arith.constant 5.000000e-01 : f32
    %323 = vector.broadcast %cst_193 : f32 to vector<8x64xf32>
    %324 = arith.mulf %323, %322 : vector<8x64xf32>
    %cst_194 = arith.constant 4.471500e-02 : f32
    %325 = vector.broadcast %cst_194 : f32 to vector<8x64xf32>
    %326 = arith.mulf %325, %322 : vector<8x64xf32>
    %327 = arith.mulf %326, %322 : vector<8x64xf32>
    %328 = arith.mulf %327, %322 : vector<8x64xf32>
    %329 = arith.addf %322, %328 : vector<8x64xf32>
    %cst_195 = arith.constant 0.797884583 : f32
    %330 = vector.broadcast %cst_195 : f32 to vector<8x64xf32>
    %331 = arith.mulf %330, %329 : vector<8x64xf32>
    %332 = math.tanh %331 : vector<8x64xf32>
    %cst_196 = arith.constant 1.000000e+00 : f32
    %333 = vector.broadcast %cst_196 : f32 to vector<8x64xf32>
    %334 = arith.addf %333, %332 : vector<8x64xf32>
    %335 = arith.mulf %324, %334 : vector<8x64xf32>
    %c1_197 = arith.constant 1 : index
    %c0_198 = arith.constant 0 : index
    %c0_199 = arith.constant 0 : index
    %336 = vector.load %arg13[%c1_197, %c0_198, %c0_199] : memref<2x64x32xf32, #tpu.memory_space<vmem>>, vector<1x64x32xf32>
    %337 = vector.shape_cast %336 : vector<1x64x32xf32> to vector<64x32xf32>
    %cst_200 = arith.constant dense<0.000000e+00> : vector<8x32xf32>
    %338 = tpu.matmul %335, %337, %cst_200 {dimension_numbers = #tpu.dot_dimension_numbers<[1], [0], [0], [1], [0, 0, 1, 1], [], []>} : vector<8x64xf32>, vector<64x32xf32>, vector<8x32xf32> -> vector<8x32xf32>
    %c1_201 = arith.constant 1 : index
    %c0_202 = arith.constant 0 : index
    %c0_203 = arith.constant 0 : index
    %339 = vector.load %arg14[%c1_201, %c0_202, %c0_203] : memref<2x1x32xf32, #tpu.memory_space<vmem>>, vector<1x1x32xf32>
    %340 = vector.shape_cast %339 : vector<1x1x32xf32> to vector<1x32xf32>
    %341 = vector.broadcast %340 : vector<1x32xf32> to vector<8x32xf32>
    %342 = arith.addf %338, %341 : vector<8x32xf32>
    %343 = arith.addf %342, %315 : vector<8x32xf32>
    %c1_204 = arith.constant 1 : index
    %c0_205 = arith.constant 0 : index
    %c0_206 = arith.constant 0 : index
    %344 = vector.load %arg15[%c1_204, %c0_205, %c0_206] : memref<2x1x32xf32, #tpu.memory_space<vmem>>, vector<1x1x32xf32>
    %345 = vector.shape_cast %344 : vector<1x1x32xf32> to vector<1x32xf32>
    %c1_207 = arith.constant 1 : index
    %c0_208 = arith.constant 0 : index
    %c0_209 = arith.constant 0 : index
    %346 = vector.load %arg16[%c1_207, %c0_208, %c0_209] : memref<2x1x32xf32, #tpu.memory_space<vmem>>, vector<1x1x32xf32>
    %347 = vector.shape_cast %346 : vector<1x1x32xf32> to vector<1x32xf32>
    %cst_210 = arith.constant dense<0.000000e+00> : vector<8xf32>
    %348 = vector.multi_reduction <add>, %343, %cst_210 [1] : vector<8x32xf32> to vector<8xf32>
    %349 = vector.shape_cast %348 : vector<8xf32> to vector<8x1xf32>
    %cst_211 = arith.constant 3.200000e+01 : f32
    %350 = vector.broadcast %cst_211 : f32 to vector<8x1xf32>
    %351 = arith.divf %349, %350 : vector<8x1xf32>
    %352 = vector.broadcast %351 : vector<8x1xf32> to vector<8x32xf32>
    %353 = arith.subf %343, %352 : vector<8x32xf32>
    %354 = arith.mulf %353, %353 : vector<8x32xf32>
    %cst_212 = arith.constant dense<0.000000e+00> : vector<8xf32>
    %355 = vector.multi_reduction <add>, %354, %cst_212 [1] : vector<8x32xf32> to vector<8xf32>
    %356 = vector.shape_cast %355 : vector<8xf32> to vector<8x1xf32>
    %cst_213 = arith.constant 3.200000e+01 : f32
    %357 = vector.broadcast %cst_213 : f32 to vector<8x1xf32>
    %358 = arith.divf %356, %357 : vector<8x1xf32>
    %359 = vector.broadcast %351 : vector<8x1xf32> to vector<8x32xf32>
    %360 = arith.subf %343, %359 : vector<8x32xf32>
    %cst_214 = arith.constant 9.99999996E-13 : f32
    %361 = vector.broadcast %cst_214 : f32 to vector<8x1xf32>
    %362 = arith.addf %358, %361 : vector<8x1xf32>
    %363 = math.rsqrt %362 : vector<8x1xf32>
    %364 = vector.broadcast %363 : vector<8x1xf32> to vector<8x32xf32>
    %365 = arith.mulf %360, %364 : vector<8x32xf32>
    %366 = vector.broadcast %345 : vector<1x32xf32> to vector<8x32xf32>
    %367 = arith.mulf %365, %366 : vector<8x32xf32>
    %368 = vector.broadcast %347 : vector<1x32xf32> to vector<8x32xf32>
    %369 = arith.addf %367, %368 : vector<8x32xf32>
    %370 = vector.extract_strided_slice %369 {offsets = [0, 0], sizes = [1, 32], strides = [1, 1]} : vector<8x32xf32> to vector<1x32xf32>
    %c0_215 = arith.constant 0 : index
    %c0_216 = arith.constant 0 : index
    %371 = vector.load %arg17[%c0_215, %c0_216] : memref<32x32xf32, #tpu.memory_space<vmem>>, vector<32x32xf32>
    %cst_217 = arith.constant dense<0.000000e+00> : vector<1x32xf32>
    %372 = tpu.matmul %370, %371, %cst_217 {dimension_numbers = #tpu.dot_dimension_numbers<[1], [0], [0], [1], [0, 0, 1, 1], [], []>} : vector<1x32xf32>, vector<32x32xf32>, vector<1x32xf32> -> vector<1x32xf32>
    %c0_218 = arith.constant 0 : index
    %c0_219 = arith.constant 0 : index
    %373 = vector.load %arg18[%c0_218, %c0_219] : memref<1x32xf32, #tpu.memory_space<vmem>>, vector<1x32xf32>
    %374 = arith.addf %372, %373 : vector<1x32xf32>
    %375 = math.tanh %374 : vector<1x32xf32>
    %c0_220 = arith.constant 0 : index
    %c0_221 = arith.constant 0 : index
    %376 = vector.load %arg19[%c0_220, %c0_221] : memref<32x3xf32, #tpu.memory_space<vmem>>, vector<32x3xf32>
    %cst_222 = arith.constant dense<0.000000e+00> : vector<1x3xf32>
    %377 = tpu.matmul %375, %376, %cst_222 {dimension_numbers = #tpu.dot_dimension_numbers<[1], [0], [0], [1], [0, 0, 1, 1], [], []>} : vector<1x32xf32>, vector<32x3xf32>, vector<1x3xf32> -> vector<1x3xf32>
    %c0_223 = arith.constant 0 : index
    %c0_224 = arith.constant 0 : index
    %378 = vector.load %arg20[%c0_223, %c0_224] : memref<1x3xf32, #tpu.memory_space<vmem>>, vector<1x3xf32>
    %379 = arith.addf %377, %378 : vector<1x3xf32>
    %c0_225 = arith.constant 0 : index
    %c0_226 = arith.constant 0 : index
    %c0_227 = arith.constant 0 : index
    %380 = vector.load %arg21[%c0_225, %c0_226, %c0_227] : memref<1x1x3xf32, #tpu.memory_space<vmem>>, vector<1x1x3xf32>
    %381 = vector.shape_cast %380 : vector<1x1x3xf32> to vector<1x3xf32>
    %382 = vector.shape_cast %379 : vector<1x3xf32> to vector<1x1x3xf32>
    tpu.vector_store %arg21[%c0_225, %c0_226, %c0_227], %382 {strides = array<i32>} : memref<1x1x3xf32, #tpu.memory_space<vmem>>, vector<1x1x3xf32>,
    return
  }
  func.func @transform_0(%arg0: i32) -> (i32, i32, i32) {
    %c0_i32 = arith.constant 0 : i32
    %c0_i32_0 = arith.constant 0 : i32
    %c0_i32_1 = arith.constant 0 : i32
    return %arg0, %c0_i32, %c0_i32_0 : i32, i32, i32
  }
  func.func @transform_1(%arg0: i32) -> (i32, i32, i32) {
    %c0_i32 = arith.constant 0 : i32
    %c0_i32_0 = arith.constant 0 : i32
    %c0_i32_1 = arith.constant 0 : i32
    return %arg0, %c0_i32, %c0_i32_0 : i32, i32, i32
  }
  func.func @transform_2(%arg0: i32) -> (i32, i32) {
    %c0_i32 = arith.constant 0 : i32
    %c0_i32_0 = arith.constant 0 : i32
    %c0_i32_1 = arith.constant 0 : i32
    return %c0_i32, %c0_i32_0 : i32, i32
  }
  func.func @transform_3(%arg0: i32) -> (i32, i32) {
    %c0_i32 = arith.constant 0 : i32
    %c0_i32_0 = arith.constant 0 : i32
    %c0_i32_1 = arith.constant 0 : i32
    return %c0_i32, %c0_i32_0 : i32, i32
  }
  func.func @transform_4(%arg0: i32) -> (i32, i32, i32) {
    %c0_i32 = arith.constant 0 : i32
    %c0_i32_0 = arith.constant 0 : i32
    %c0_i32_1 = arith.constant 0 : i32
    %c0_i32_2 = arith.constant 0 : i32
    return %c0_i32, %c0_i32_0, %c0_i32_1 : i32, i32, i32
  }
  func.func @transform_5(%arg0: i32) -> (i32, i32, i32) {
    %c0_i32 = arith.constant 0 : i32
    %c0_i32_0 = arith.constant 0 : i32
    %c0_i32_1 = arith.constant 0 : i32
    %c0_i32_2 = arith.constant 0 : i32
    return %c0_i32, %c0_i32_0, %c0_i32_1 : i32, i32, i32
  }
  func.func @transform_6(%arg0: i32) -> (i32, i32, i32) {
    %c0_i32 = arith.constant 0 : i32
    %c0_i32_0 = arith.constant 0 : i32
    %c0_i32_1 = arith.constant 0 : i32
    %c0_i32_2 = arith.constant 0 : i32
    return %c0_i32, %c0_i32_0, %c0_i32_1 : i32, i32, i32
  }
  func.func @transform_7(%arg0: i32) -> (i32, i32, i32) {
    %c0_i32 = arith.constant 0 : i32
    %c0_i32_0 = arith.constant 0 : i32
    %c0_i32_1 = arith.constant 0 : i32
    %c0_i32_2 = arith.constant 0 : i32
    return %c0_i32, %c0_i32_0, %c0_i32_1 : i32, i32, i32
  }
  func.func @transform_8(%arg0: i32) -> (i32, i32, i32) {
    %c0_i32 = arith.constant 0 : i32
    %c0_i32_0 = arith.constant 0 : i32
    %c0_i32_1 = arith.constant 0 : i32
    %c0_i32_2 = arith.constant 0 : i32
    return %c0_i32, %c0_i32_0, %c0_i32_1 : i32, i32, i32
  }
  func.func @transform_9(%arg0: i32) -> (i32, i32, i32) {
    %c0_i32 = arith.constant 0 : i32
    %c0_i32_0 = arith.constant 0 : i32
    %c0_i32_1 = arith.constant 0 : i32
    %c0_i32_2 = arith.constant 0 : i32
    return %c0_i32, %c0_i32_0, %c0_i32_1 : i32, i32, i32
  }
  func.func @transform_10(%arg0: i32) -> (i32, i32, i32) {
    %c0_i32 = arith.constant 0 : i32
    %c0_i32_0 = arith.constant 0 : i32
    %c0_i32_1 = arith.constant 0 : i32
    %c0_i32_2 = arith.constant 0 : i32
    return %c0_i32, %c0_i32_0, %c0_i32_1 : i32, i32, i32
  }
  func.func @transform_11(%arg0: i32) -> (i32, i32, i32) {
    %c0_i32 = arith.constant 0 : i32
    %c0_i32_0 = arith.constant 0 : i32
    %c0_i32_1 = arith.constant 0 : i32
    %c0_i32_2 = arith.constant 0 : i32
    return %c0_i32, %c0_i32_0, %c0_i32_1 : i32, i32, i32
  }
  func.func @transform_12(%arg0: i32) -> (i32, i32, i32) {
    %c0_i32 = arith.constant 0 : i32
    %c0_i32_0 = arith.constant 0 : i32
    %c0_i32_1 = arith.constant 0 : i32
    %c0_i32_2 = arith.constant 0 : i32
    return %c0_i32, %c0_i32_0, %c0_i32_1 : i32, i32, i32
  }
  func.func @transform_13(%arg0: i32) -> (i32, i32, i32) {
    %c0_i32 = arith.constant 0 : i32
    %c0_i32_0 = arith.constant 0 : i32
    %c0_i32_1 = arith.constant 0 : i32
    %c0_i32_2 = arith.constant 0 : i32
    return %c0_i32, %c0_i32_0, %c0_i32_1 : i32, i32, i32
  }
  func.func @transform_14(%arg0: i32) -> (i32, i32, i32) {
    %c0_i32 = arith.constant 0 : i32
    %c0_i32_0 = arith.constant 0 : i32
    %c0_i32_1 = arith.constant 0 : i32
    %c0_i32_2 = arith.constant 0 : i32
    return %c0_i32, %c0_i32_0, %c0_i32_1 : i32, i32, i32
  }
  func.func @transform_15(%arg0: i32) -> (i32, i32, i32) {
    %c0_i32 = arith.constant 0 : i32
    %c0_i32_0 = arith.constant 0 : i32
    %c0_i32_1 = arith.constant 0 : i32
    %c0_i32_2 = arith.constant 0 : i32
    return %c0_i32, %c0_i32_0, %c0_i32_1 : i32, i32, i32
  }
  func.func @transform_16(%arg0: i32) -> (i32, i32) {
    %c0_i32 = arith.constant 0 : i32
    %c0_i32_0 = arith.constant 0 : i32
    %c0_i32_1 = arith.constant 0 : i32
    return %c0_i32, %c0_i32_0 : i32, i32
  }
  func.func @transform_17(%arg0: i32) -> (i32, i32) {
    %c0_i32 = arith.constant 0 : i32
    %c0_i32_0 = arith.constant 0 : i32
    %c0_i32_1 = arith.constant 0 : i32
    return %c0_i32, %c0_i32_0 : i32, i32
  }
  func.func @transform_18(%arg0: i32) -> (i32, i32) {
    %c0_i32 = arith.constant 0 : i32
    %c0_i32_0 = arith.constant 0 : i32
    %c0_i32_1 = arith.constant 0 : i32
    return %c0_i32, %c0_i32_0 : i32, i32
  }
  func.func @transform_19(%arg0: i32) -> (i32, i32) {
    %c0_i32 = arith.constant 0 : i32
    %c0_i32_0 = arith.constant 0 : i32
    %c0_i32_1 = arith.constant 0 : i32
    return %c0_i32, %c0_i32_0 : i32, i32
  }
  func.func @transform_20(%arg0: i32) -> (i32, i32, i32) {
    %c0_i32 = arith.constant 0 : i32
    %c0_i32_0 = arith.constant 0 : i32
    %c0_i32_1 = arith.constant 0 : i32
    return %arg0, %c0_i32, %c0_i32_0 : i32, i32, i32
  }
}

</mosaic_0001>

<bundles_post_ra>
// kernel: tpu_custom_call.1
= control target key start
LH: loop header
LB: loop body
LE: loop exit
PB: predicated region body
PF: predicated region fallthrough
CT: control target
= control target key end

     0   :  { %s5609_s0 = inlined_call_operand.hbm [shape: f32[2,8,32], index: 0, kind: input, shape index: {}]   ;;  %s5610_s1 = inlined_call_operand.hbm [shape: f32[2,1,8], index: 1, kind: input, shape index: {}]   ;;  %s5611_s2 = inlined_call_operand.hbm [shape: f32[1,32], index: 2, kind: input, shape index: {}]   ;;  %s5612_s3 = inlined_call_operand.hbm [shape: f32[1,32], index: 3, kind: input, shape index: {}]   ;;  %s5613_s4 = inlined_call_operand.vmem [shape: f32[2,32,96], index: 4, kind: input, shape index: {}]   ;;  %s5614_s5 = inlined_call_operand.hbm [shape: f32[2,1,96], index: 5, kind: input, shape index: {}]   ;;  %s5615_s6 = inlined_call_operand.vmem [shape: f32[2,32,32], index: 6, kind: input, shape index: {}]   ;;  %s5616_s7 = inlined_call_operand.hbm [shape: f32[2,1,32], index: 7, kind: input, shape index: {}]   ;;  %s5617_s8 = inlined_call_operand.hbm [shape: f32[2,1,32], index: 8, kind: input, shape index: {}]   ;;  %s5618_s9 = inlined_call_operand.hbm [shape: f32[2,1,32], index: 9, kind: input, shape index: {}]   ;;  %s5619_s10 = inlined_call_operand.vmem [shape: f32[2,32,64], index: 10, kind: input, shape index: {}]   ;;  %s5620_s11 = inlined_call_operand.hbm [shape: f32[2,1,64], index: 11, kind: input, shape index: {}]   ;;  %s5621_s12 = inlined_call_operand.vmem [shape: f32[2,64,32], index: 12, kind: input, shape index: {}]   ;;  %s5622_s13 = inlined_call_operand.hbm [shape: f32[2,1,32], index: 13, kind: input, shape index: {}]   ;;  %s5623_s14 = inlined_call_operand.hbm [shape: f32[2,1,32], index: 14, kind: input, shape index: {}]   ;;  %s5624_s15 = inlined_call_operand.hbm [shape: f32[2,1,32], index: 15, kind: input, shape index: {}]   ;;  %s5625_s16 = inlined_call_operand.vmem [shape: f32[32,32], index: 16, kind: input, shape index: {}]   ;;  %s5626_s17 = inlined_call_operand.hbm [shape: f32[1,32], index: 17, kind: input, shape index: {}]   ;;  %s5627_s18 = inlined_call_operand.vmem [shape: f32[32,3], index: 18, kind: input, shape index: {}]   ;;  %s5628_s19 = inlined_call_operand.vmem [shape: f32[1,3], index: 19, kind: input, shape index: {}]   ;;  %s5629_s20 = inlined_call_operand.hbm [shape: f32[2,1,3], index: 20, kind: output, shape index: {}]  }
   0x1   :  { %5668 = sst [smem:[#allocation37_spill]] %s5609_s0 }
   0x2   :  { %5669 = sst [smem:[#allocation38_spill]] %s5610_s1 }
   0x3   :  { %5670 = sst [smem:[#allocation39_spill]] %s5611_s2 }
   0x4   :  { %5671 = sst [smem:[#allocation40_spill]] %s5612_s3 }
   0x5   :  { %5672 = sst [smem:[#allocation41_spill]] %s5613_s4 }
   0x6   :  { %5673 = sst [smem:[#allocation42_spill]] %s5614_s5 }
   0x7   :  { %5674 = sst [smem:[#allocation43_spill]] %s5615_s6 }
   0x8   :  { %5675 = sst [smem:[#allocation44_spill]] %s5616_s7 }
   0x9   :  { %5676 = sst [smem:[#allocation45_spill]] %s5617_s8 }
   0xa   :  { %5677 = sst [smem:[#allocation46_spill]] %s5618_s9 }
   0xb   :  { %5678 = sst [smem:[#allocation47_spill]] %s5619_s10 }
   0xc   :  { %5679 = sst [smem:[#allocation48_spill]] %s5621_s12 }
   0xd   :  { %5680 = sst [smem:[#allocation49_spill]] %s5625_s16 }
   0xe   :  { %5681 = sst [smem:[#allocation50_spill]] %s5627_s18 }
   0xf   :  { %5682 = sst [smem:[#allocation51_spill]] %s5628_s19 }
  0x10   :  { %5683 = sst [smem:[#allocation52_spill]] %s5629_s20 }
  0x11   :  { %25 = vsyncpa [#allocation5], 0 }
  0x12   :  { %27 = vsyncpa [#allocation5 + $0x1], 0 }
  0x13   :  { %28 = vsyncpa [#allocation8], 0 }
  0x14   :  { %30 = vsyncpa [#allocation8 + $0x1], 0 }
  0x15   :  { %31 = vsyncpa [#allocation11], 0 }
  0x16   :  { %32 = vsyncpa [#allocation14], 0 }
  0x17   :  { %33 = vsyncpa [#allocation17], 0 }
  0x18   :  { %34 = vsyncpa [#allocation20], 0 }
  0x19   :  { %35 = vsyncpa [#allocation23], 0 }
  0x1a   :  { %36 = vsyncpa [#allocation6], 0 }
  0x1b   :  { %38 = vsyncpa [#allocation6 + $0x1], 0  ;;  %s4742_s1 = smov 0   ;;  %s4744_s22 = smov 0  }
  0x1c   :  { %s4746_s23 = smov 0   ;;  %s4748_s24 = smov 0  }
  0x1d LB: > { %s4604_s2 = smov [#allocation9]   ;;  %s4763_s3 = sadd.s32 4294967295, %s4602_s24   ;;  %s4602_s24 = sphi %s4748_s24, %s5748_s24   ;;  %s4598_s23 = sphi %s4746_s23, %s5747_s23   ;;  %s4594_s22 = sphi %s4744_s22, %s5746_s22   ;;  %s4590_s1 = sphi %s4742_s1, %s5745_s1  }
  0x1e   : > { %s518_s25 = sshll.u32 %s4604_s2, 4  ;;  %5684 = sst [smem:[#allocation35_spill]] %s4763_s3  ;;  %s4768_s25 = int_to_ptr.vmem [resolvable:$true] %s518_s25 }
  0x1f   : > { %p3439_p0 = scmp.ge.s32.totalorder %s4602_s24, 1  ;;  %p5647_p1 = scmp.eq.s32.totalorder %s4763_s3, 0 }
  0x20   : > { %p505_p2 = scmp.lt.s32.totalorder %s4602_s24, 3  ;;  %s4605_s27 = smov [#allocation10]  }
  0x21   : > { %s529_s28 = sshll.u32 %s4605_s27, 4  ;;  %s4606_s29 = smov [#allocation13]   ;;  %s4777_s28 = int_to_ptr.vmem [resolvable:$true] %s529_s28 }
  0x22   : > { %p4770_p3 = pnand %p3439_p0, %p505_p2  ;;  %s558_s30 = sshll.u32 %s4606_s29, 4  ;;  %s4785_s30 = int_to_ptr.vmem [resolvable:$true] %s558_s30 }
  0x23   : > { %s5688_s2 = sld [smem:[#allocation39_spill]] }
  0x24   : > { %s5685_s26 = scalar_select %p4770_p3, 1, 0 }
  0x25   : > { %p3961_p5 = pneg %p4770_p3 }
  0x26   : > { %5686 = sst [smem:[#allocation36_spill]] %s5685_s26 }
  0x27   : > { %p4781_p6 = pnand %p3961_p5, %p5647_p1 }
  0x29   : > { %s4140_s20 = scalar_lea.hbm %s5688_s2, 16  ;;  %p4795_p8 = pneg %p4781_p6 }
  0x2a   : > { %p4141_p7 = scmp.ne.s32.totalorder %s5688_s2, %s4140_s20  ;;  %p4147_p11 = scmp.lt.u32.totalorder %s4140_s20, %s5688_s2 }
  0x2c   : > { %p4143_p9 = pnand %p4795_p8, %p4141_p7 }
  0x2e   : > { %p4144_p10 = pneg %p4143_p9 }
  0x30   : > { %p4149_p12 = pnand %p4147_p11, %p4144_p10 }
  0x32   : > { %4152 = shalt.err (!%p4149_p12)
}
  0x33   : > { %s4153_s18 = scalar_lea.vmem %s4768_s25, 16  ;;  %s4160_s19 = scalar_lea.vmem %s4768_s25, 32 }
  0x34   : > { %p4154_p13 = scmp.ne.s32.totalorder %s4768_s25, %s4153_s18  ;;  %p4161_p5 = scmp.lt.s32.totalorder %s4768_s25, %s4768_s25 }
  0x35   : > { %p4162_p7 = scmp.lt.s32.totalorder %s4160_s19, %s4153_s18 }
  0x36   : > { %p4156_p0 = pnand %p4154_p13, %p4795_p8 }
  0x37   : > { %p4163_p9 = por %p4162_p7, %p4161_p5 }
  0x38   : > { %p4157_p2 = pneg %p4156_p0 }
  0x3a   : > { %p4164_p4 = pnand %p4163_p9, %p4157_p2 }
  0x3c   : > { %4167 = shalt.err (!%p4164_p4)
}
  0x3d   : > { %3964 = dma.hbm_to_vmem [thread:$0]  (!%p4781_p6), %s5688_s2, 16, %s4768_s25, [#allocation8]  }
  0x3e   : > { %s5690_s29 = sld [smem:[#allocation40_spill]] }
  0x44   : > { %s4168_s12 = scalar_lea.hbm %s5690_s29, 16 }
  0x45   : > { %p4169_p10 = scmp.ne.s32.totalorder %s5690_s29, %s4168_s12  ;;  %p4175_p4 = scmp.lt.u32.totalorder %s4168_s12, %s5690_s29 }
  0x47   : > { %p4171_p11 = pnand %p4169_p10, %p4795_p8 }
  0x49   : > { %p4172_p12 = pneg %p4171_p11 }
  0x4b   : > { %p4177_p13 = pnand %p4175_p4, %p4172_p12 }
  0x4d   : > { %4180 = shalt.err (!%p4177_p13)
}
  0x4e   : > { %s4181_s25 = scalar_lea.vmem %s4777_s28, 16  ;;  %s4188_s6 = scalar_lea.vmem %s4777_s28, 32 }
  0x4f   : > { %p4182_p0 = scmp.ne.s32.totalorder %s4777_s28, %s4181_s25  ;;  %p4189_p7 = scmp.lt.s32.totalorder %s4777_s28, %s4777_s28 }
  0x50   : > { %p4190_p9 = scmp.lt.s32.totalorder %s4188_s6, %s4181_s25 }
  0x51   : > { %p4184_p2 = pnand %p4182_p0, %p4795_p8 }
  0x52   : > { %p4191_p10 = por %p4190_p9, %p4189_p7 }
  0x53   : > { %p4185_p5 = pneg %p4184_p2 }
  0x55   : > { %p4192_p11 = pnand %p4191_p10, %p4185_p5 }
  0x57   : > { %4195 = shalt.err (!%p4192_p11)
}
  0x58   : > { %3967 = dma.hbm_to_vmem [thread:$0]  (!%p4781_p6), %s5690_s29, 16, %s4777_s28, [#allocation11]  }
  0x59   : > { %s5691_s7 = sld [smem:[#allocation44_spill]] }
  0x5f   : > { %s4196_s0 = scalar_lea.hbm %s5691_s7, 32 }
  0x60   : > { %p4197_p12 = scmp.ne.s32.totalorder %s5691_s7, %s4196_s0  ;;  %p4203_p0 = scmp.lt.u32.totalorder %s4196_s0, %s5691_s7 }
  0x62   : > { %p4199_p4 = pnand %p4197_p12, %p4795_p8 }
  0x64   : > { %p4200_p13 = pneg %p4199_p4 }
  0x66   : > { %p4205_p2 = pnand %p4203_p0, %p4200_p13 }
  0x68   : > { %4208 = shalt.err (!%p4205_p2)
}
  0x69   : > { %s4209_s28 = scalar_lea.vmem %s4785_s30, 32  ;;  %p4217_p10 = scmp.lt.s32.totalorder %s4785_s30, %s4785_s30 }
  0x6a   : > { %p4210_p5 = scmp.ne.s32.totalorder %s4785_s30, %s4209_s28  ;;  %p4218_p11 = scmp.lt.s32.totalorder %s4209_s28, %s4209_s28 }
  0x6c   : > { %p4212_p7 = pnand %p4210_p5, %p4795_p8  ;;  %p4219_p12 = por %p4218_p11, %p4217_p10 }
  0x6e   : > { %p4213_p9 = pneg %p4212_p7 }
  0x70   : > { %p4220_p4 = pnand %p4219_p12, %p4213_p9 }
  0x72   : > { %4223 = shalt.err (!%p4220_p4)
}
  0x73   : > { %s4607_s6 = smov 16   ;;  %s4608_s10 = smov 1  }
  0x74   : > { %3973 = dma.hbm_to_vmem [thread:$0]  (!%p4781_p6), %s5691_s7, 32, %s4785_s30, [#allocation14], %s4607_s6, %s4607_s6, %s4608_s10  }
  0x75   : > { %s4609_s20 = smov [#allocation16]   ;;  %s4610_s21 = smov [#allocation19]  }
  0x76   : > { %s584_s0 = sshll.u32 %s4609_s20, 4  ;;  %s616_s18 = sshll.u32 %s4610_s21, 4  ;;  %s585_s0 = int_to_ptr.vmem [resolvable:$true] %s584_s0  ;;  %s617_s18 = int_to_ptr.vmem [resolvable:$true] %s616_s18 }
  0x77   : > { %s5692_s9 = sld [smem:[#allocation46_spill]] }
  0x7d   : > { %s4224_s28 = scalar_lea.hbm %s5692_s9, 32 }
  0x7e   : > { %p4225_p13 = scmp.ne.s32.totalorder %s5692_s9, %s4224_s28  ;;  %p4231_p5 = scmp.lt.u32.totalorder %s4224_s28, %s5692_s9 }
  0x80   : > { %p4227_p0 = pnand %p4225_p13, %p4795_p8 }
  0x82   : > { %p4228_p2 = pneg %p4227_p0 }
  0x84   : > { %p4233_p7 = pnand %p4231_p5, %p4228_p2 }
  0x86   : > { %4236 = shalt.err (!%p4233_p7)
}
  0x87   : > { %s4237_s30 = scalar_lea.vmem %s585_s0, 32  ;;  %p4245_p12 = scmp.lt.s32.totalorder %s585_s0, %s585_s0 }
  0x88   : > { %p4238_p9 = scmp.ne.s32.totalorder %s585_s0, %s4237_s30  ;;  %p4246_p4 = scmp.lt.s32.totalorder %s4237_s30, %s4237_s30 }
  0x8a   : > { %p4240_p10 = pnand %p4238_p9, %p4795_p8  ;;  %p4247_p1 = por %p4246_p4, %p4245_p12 }
  0x8c   : > { %p4241_p11 = pneg %p4240_p10 }
  0x8e   : > { %p4248_p3 = pnand %p4247_p1, %p4241_p11 }
  0x90   : > { %4251 = shalt.err (!%p4248_p3)
}
  0x91   : > { %3979 = dma.hbm_to_vmem [thread:$0]  (!%p4781_p6), %s5692_s9, 32, %s585_s0, [#allocation17], %s4607_s6, %s4607_s6, %s4608_s10  }
  0x92   : > { %s4252_s12 = scalar_lea.hbm %s5622_s13, 32 }
  0x93   : > { %p4253_p1 = scmp.ne.s32.totalorder %s5622_s13, %s4252_s12  ;;  %p4259_p0 = scmp.lt.u32.totalorder %s4252_s12, %s5622_s13 }
  0x95   : > { %p4255_p3 = pnand %p4253_p1, %p4795_p8 }
  0x97   : > { %p4256_p13 = pneg %p4255_p3 }
  0x99   : > { %p4261_p2 = pnand %p4259_p0, %p4256_p13 }
  0x9b   : > { %4264 = shalt.err (!%p4261_p2)
}
  0x9c   : > { %s4265_s25 = scalar_lea.vmem %s617_s18, 32  ;;  %p4273_p10 = scmp.lt.s32.totalorder %s617_s18, %s617_s18 }
  0x9d   : > { %p4266_p5 = scmp.ne.s32.totalorder %s617_s18, %s4265_s25  ;;  %p4274_p11 = scmp.lt.s32.totalorder %s4265_s25, %s4265_s25 }
  0x9f   : > { %p4268_p7 = pnand %p4266_p5, %p4795_p8  ;;  %p4275_p12 = por %p4274_p11, %p4273_p10 }
  0xa1   : > { %p4269_p9 = pneg %p4268_p7 }
  0xa3   : > { %p4276_p4 = pnand %p4275_p12, %p4269_p9 }
  0xa5   : > { %4279 = shalt.err (!%p4276_p4)
}
  0xa6   : > { %3985 = dma.hbm_to_vmem [thread:$0]  (!%p4781_p6), %s5622_s13, 32, %s617_s18, [#allocation20], %s4607_s6, %s4607_s6, %s4608_s10  }
  0xa7   : > { %s4611_s30 = smov [#allocation22]   ;;  %s4612_s26 = smov [#allocation12]  }
  0xa8   : > { %s642_s3 = sshll.u32 %s4611_s30, 4  ;;  %s542_s2 = sshll.u32 %s4612_s26, 4  ;;  %s643_s3 = int_to_ptr.vmem [resolvable:$true] %s642_s3  ;;  %s543_s2 = int_to_ptr.vmem [resolvable:$true] %s542_s2 }
  0xa9   : > { %s4280_s16 = scalar_lea.hbm %s5624_s15, 32 }
  0xaa   : > { %p4281_p1 = scmp.ne.s32.totalorder %s5624_s15, %s4280_s16  ;;  %p4287_p0 = scmp.lt.u32.totalorder %s4280_s16, %s5624_s15 }
  0xac   : > { %p4283_p3 = pnand %p4281_p1, %p4795_p8 }
  0xae   : > { %p4284_p13 = pneg %p4283_p3 }
  0xb0   : > { %p4289_p2 = pnand %p4287_p0, %p4284_p13 }
  0xb2   : > { %4292 = shalt.err (!%p4289_p2)
}
  0xb3   : > { %s4293_s18 = scalar_lea.vmem %s643_s3, 32  ;;  %p4301_p10 = scmp.lt.s32.totalorder %s643_s3, %s643_s3 }
  0xb4   : > { %p4294_p5 = scmp.ne.s32.totalorder %s643_s3, %s4293_s18  ;;  %p4302_p11 = scmp.lt.s32.totalorder %s4293_s18, %s4293_s18 }
  0xb6   : > { %p4296_p7 = pnand %p4294_p5, %p4795_p8  ;;  %p4303_p12 = por %p4302_p11, %p4301_p10 }
  0xb8   : > { %p4297_p9 = pneg %p4296_p7 }
  0xba   : > { %p4304_p4 = pnand %p4303_p12, %p4297_p9 }
  0xbc   : > { %4307 = shalt.err (!%p4304_p4)
}
  0xbd   : > { %3991 = dma.hbm_to_vmem [thread:$0]  (!%p4781_p6), %s5624_s15, 32, %s643_s3, [#allocation23], %s4607_s6, %s4607_s6, %s4608_s10  }
  0xbe   : > { %s5693_s5 = sld [smem:[#allocation42_spill]] }
  0xc4   : > { %s4308_s29 = scalar_lea.hbm %s5693_s5, 32 }
  0xc5   : > { %p4309_p1 = scmp.ne.s32.totalorder %s5693_s5, %s4308_s29  ;;  %p4315_p0 = scmp.lt.u32.totalorder %s4308_s29, %s5693_s5 }
  0xc7   : > { %p4311_p3 = pnand %p4309_p1, %p4795_p8 }
  0xc9   : > { %p4312_p13 = pneg %p4311_p3 }
  0xcb   : > { %p4317_p2 = pnand %p4315_p0, %p4312_p13 }
  0xcd   : > { %4320 = shalt.err (!%p4317_p2)
}
  0xce   : > { %s4321_s19 = scalar_lea.vmem %s543_s2, 32  ;;  %p4329_p10 = scmp.lt.s32.totalorder %s543_s2, %s543_s2 }
  0xcf   : > { %p4322_p5 = scmp.ne.s32.totalorder %s543_s2, %s4321_s19  ;;  %p4330_p11 = scmp.lt.s32.totalorder %s4321_s19, %s4321_s19 }
  0xd1   : > { %p4324_p7 = pnand %p4322_p5, %p4795_p8  ;;  %p4331_p12 = por %p4330_p11, %p4329_p10 }
  0xd3   : > { %p4325_p9 = pneg %p4324_p7 }
  0xd5   : > { %p4332_p4 = pnand %p4331_p12, %p4325_p9 }
  0xd7   : > { %4335 = shalt.err (!%p4332_p4)
}
  0xd8   : > { %3970 = dma.hbm_to_vmem [thread:$0]  (!%p4781_p6), %s5693_s5, 32, %s543_s2, [#allocation11], %s4607_s6, %s4607_s6, %s4608_s10  }
  0xd9   : > { %s4613_s18 = smov [#allocation15]   ;;  %s4614_s28 = smov [#allocation18]  }
  0xda   : > { %s571_s0 = sshll.u32 %s4613_s18, 4  ;;  %s600_s30 = sshll.u32 %s4614_s28, 4  ;;  %s572_s0 = int_to_ptr.vmem [resolvable:$true] %s571_s0  ;;  %s601_s30 = int_to_ptr.vmem [resolvable:$true] %s600_s30 }
  0xdb   : > { %s5694_s8 = sld [smem:[#allocation45_spill]] }
  0xe1   : > { %s4336_s12 = scalar_lea.hbm %s5694_s8, 32 }
  0xe2   : > { %p4337_p1 = scmp.ne.s32.totalorder %s5694_s8, %s4336_s12  ;;  %p4343_p0 = scmp.lt.u32.totalorder %s4336_s12, %s5694_s8 }
  0xe4   : > { %p4339_p3 = pnand %p4337_p1, %p4795_p8 }
  0xe6   : > { %p4340_p13 = pneg %p4339_p3 }
  0xe8   : > { %p4345_p2 = pnand %p4343_p0, %p4340_p13 }
  0xea   : > { %4348 = shalt.err (!%p4345_p2)
}
  0xeb   : > { %s4349_s2 = scalar_lea.vmem %s572_s0, 32  ;;  %p4357_p10 = scmp.lt.s32.totalorder %s572_s0, %s572_s0 }
  0xec   : > { %p4350_p5 = scmp.ne.s32.totalorder %s572_s0, %s4349_s2  ;;  %p4358_p11 = scmp.lt.s32.totalorder %s4349_s2, %s4349_s2 }
  0xee   : > { %p4352_p7 = pnand %p4350_p5, %p4795_p8  ;;  %p4359_p12 = por %p4358_p11, %p4357_p10 }
  0xf0   : > { %p4353_p9 = pneg %p4352_p7 }
  0xf2   : > { %p4360_p4 = pnand %p4359_p12, %p4353_p9 }
  0xf4   : > { %4363 = shalt.err (!%p4360_p4)
}
  0xf5   : > { %3976 = dma.hbm_to_vmem [thread:$0]  (!%p4781_p6), %s5694_s8, 32, %s572_s0, [#allocation14], %s4607_s6, %s4607_s6, %s4608_s10  }
  0xf6   : > { %s4364_s26 = scalar_lea.hbm %s5620_s11, 32 }
  0xf7   : > { %p4365_p1 = scmp.ne.s32.totalorder %s5620_s11, %s4364_s26  ;;  %p4371_p0 = scmp.lt.u32.totalorder %s4364_s26, %s5620_s11 }
  0xf9   : > { %p4367_p3 = pnand %p4365_p1, %p4795_p8 }
  0xfb   : > { %p4368_p13 = pneg %p4367_p3 }
  0xfd   : > { %p4373_p2 = pnand %p4371_p0, %p4368_p13 }
  0xff   : > { %4376 = shalt.err (!%p4373_p2)
}
 0x100   : > { %s4377_s21 = scalar_lea.vmem %s601_s30, 32  ;;  %p4385_p10 = scmp.lt.s32.totalorder %s601_s30, %s601_s30 }
 0x101   : > { %p4378_p5 = scmp.ne.s32.totalorder %s601_s30, %s4377_s21  ;;  %p4386_p11 = scmp.lt.s32.totalorder %s4377_s21, %s4377_s21 }
 0x103   : > { %p4380_p7 = pnand %p4378_p5, %p4795_p8  ;;  %p4387_p12 = por %p4386_p11, %p4385_p10 }
 0x105   : > { %p4381_p9 = pneg %p4380_p7 }
 0x107   : > { %p4388_p4 = pnand %p4387_p12, %p4381_p9 }
 0x109   : > { %4391 = shalt.err (!%p4388_p4)
}
 0x10a   : > { %3982 = dma.hbm_to_vmem [thread:$0]  (!%p4781_p6), %s5620_s11, 32, %s601_s30, [#allocation17], %s4607_s6, %s4607_s6, %s4608_s10  }
 0x10b   : > { %s4615_s2 = smov [#allocation21]   ;;  %s4616_s25 = smov [#allocation24]  }
 0x10c   : > { %s629_s3 = sshll.u32 %s4615_s2, 4  ;;  %s659_s18 = sshll.u32 %s4616_s25, 4  ;;  %s630_s3 = int_to_ptr.vmem [resolvable:$true] %s629_s3  ;;  %s660_s18 = int_to_ptr.vmem [resolvable:$true] %s659_s18 }
 0x10d   : > { %s4392_s29 = scalar_lea.hbm %s5623_s14, 32 }
 0x10e   : > { %p4393_p1 = scmp.ne.s32.totalorder %s5623_s14, %s4392_s29  ;;  %p4399_p0 = scmp.lt.u32.totalorder %s4392_s29, %s5623_s14 }
 0x110   : > { %p4395_p3 = pnand %p4393_p1, %p4795_p8 }
 0x112   : > { %p4396_p13 = pneg %p4395_p3 }
 0x114   : > { %p4401_p2 = pnand %p4399_p0, %p4396_p13 }
 0x116   : > { %4404 = shalt.err (!%p4401_p2)
}
 0x117   : > { %s4405_s30 = scalar_lea.vmem %s630_s3, 32  ;;  %p4413_p10 = scmp.lt.s32.totalorder %s630_s3, %s630_s3 }
 0x118   : > { %p4406_p5 = scmp.ne.s32.totalorder %s630_s3, %s4405_s30  ;;  %p4414_p11 = scmp.lt.s32.totalorder %s4405_s30, %s4405_s30 }
 0x11a   : > { %p4408_p7 = pnand %p4406_p5, %p4795_p8  ;;  %p4415_p12 = por %p4414_p11, %p4413_p10 }
 0x11c   : > { %p4409_p9 = pneg %p4408_p7 }
 0x11e   : > { %p4416_p4 = pnand %p4415_p12, %p4409_p9 }
 0x120   : > { %4419 = shalt.err (!%p4416_p4)
}
 0x121   : > { %3988 = dma.hbm_to_vmem [thread:$0]  (!%p4781_p6), %s5623_s14, 32, %s630_s3, [#allocation20], %s4607_s6, %s4607_s6, %s4608_s10  }
 0x122   : > { %s4420_s28 = scalar_lea.hbm %s5626_s17, 16 }
 0x123   : > { %p4421_p1 = scmp.ne.s32.totalorder %s5626_s17, %s4420_s28  ;;  %p4427_p0 = scmp.lt.u32.totalorder %s4420_s28, %s5626_s17 }
 0x125   : > { %p4423_p3 = pnand %p4421_p1, %p4795_p8 }
 0x127   : > { %p4424_p13 = pneg %p4423_p3 }
 0x129   : > { %p4429_p2 = pnand %p4427_p0, %p4424_p13 }
 0x12b   : > { %4432 = shalt.err (!%p4429_p2)
}
 0x12c   : > { %s4433_s20 = scalar_lea.vmem %s660_s18, 16  ;;  %s4440_s6 = scalar_lea.vmem %s660_s18, 32 }
 0x12d   : > { %p4434_p5 = scmp.ne.s32.totalorder %s660_s18, %s4433_s20  ;;  %p4441_p10 = scmp.lt.s32.totalorder %s660_s18, %s660_s18 }
 0x12e   : > { %p4442_p11 = scmp.lt.s32.totalorder %s4440_s6, %s4433_s20 }
 0x12f   : > { %p4436_p7 = pnand %p4434_p5, %p4795_p8 }
 0x130   : > { %p4443_p12 = por %p4442_p11, %p4441_p10 }
 0x131   : > { %p4437_p9 = pneg %p4436_p7 }
 0x133   : > { %p4444_p4 = pnand %p4443_p12, %p4437_p9 }
 0x135   : > { %4447 = shalt.err (!%p4444_p4)
}
 0x136   : > { %s5695_s27 = sld [smem:[#allocation35_spill]]  ;;  %s3438_s21 = sadd.s32 4294967294, %s4602_s24  }
 0x137   : > { %3994 = dma.hbm_to_vmem [thread:$0]  (!%p4781_p6), %s5626_s17, 16, %s660_s18, [#allocation23]  }
 0x138   : > { %s5034_s4 = sadd.s32 1, %s4602_s24   ;;  %s51_s30 = sadd.s32 1, %s4598_s23 }
 0x139   : > { %s48_s0 = ssub.s32 %s4602_s24, %s5034_s4  ;;  %p58_p8 = scmp.ne.s32.totalorder %s4598_s23, %s4594_s22 }
 0x13a   : > { %p49_p1 = scmp.eq.s32.totalorder %s48_s0, 0  ;;  %p59_p3 = scmp.eq.s32.totalorder %s4602_s24, 0 }
 0x13b   : > { %p64_p13 = scmp.ne.s32.totalorder %s4594_s22, %s4590_s1  ;;  %p498_p9 = scmp.eq.s32.totalorder %s3438_s21, 1 }
 0x13c   : > { %p492_p0 = scmp.eq.s32.totalorder %s5695_s27, 1  ;;  %p60_p2 = por %p59_p3, %p58_p8 }
 0x13d   : > { %s5046_s19 = scalar_select %p49_p1, %s4598_s23, %s51_s30  }
 0x13e   : > { %p5696_p5 = scmp.eq.s32.totalorder %s5695_s27, 0  ;;  %p5054_p6 = por %p492_p0, %p58_p8 }
 0x13f   : > { %p4017_p10 = scmp.lt.s32.totalorder %s4602_s24, 2  ;;  %s5060_s25 = sand.u32 1, %s4598_s23  }
 0x140   : > { %p5050_p7 = por %p5696_p5, %p64_p13  ;;  %p5062_p11 = por %p498_p9, %p64_p13 }
 0x141   : > { %s5698_s2 = scalar_select %p5054_p6, 1, 0 }
 0x142   : > { %s5697_s18 = scalar_select %p5050_p7, 1, 0 }
 0x143   : > { %s5699_s28 = scalar_select %p5062_p11, 1, 0 }
 0x144   : > { %s3452_s26 = sshll.u32 %s5060_s25, 3  ;;  %s3453_s29 = sshll.u32 %s4602_s24, 7 }
 0x145   : > { %s5700_s20 = sld [smem:[#allocation37_spill]]  ;;  %s680_s10 = scalar_lea.vmem [#allocation4], %s3452_s26 }
 0x146   : > { %s687_s3 = sshll.u32 %s680_s10, 4  ;;  %p5073_p12 = pnand %p4017_p10, %p60_p2  ;;  %s5077_s3 = int_to_ptr.vmem [resolvable:$true] %s687_s3 }
 0x147   : > { %s677_s30 = scalar_lea.sflag [#allocation5], %s5060_s25 }
 0x148   : > { %p4450_p8 = pneg %p5073_p12 }
 0x14b   : > { %s5071_s6 = scalar_lea.hbm %s5700_s20, %s3453_s29  ;;  %s4453_s12 = scalar_lea.hbm %s5700_s20, 256 }
 0x14c   : > { %s4448_s0 = scalar_lea.hbm %s5071_s6, 128  ;;  %p4454_p13 = scmp.lt.u32.totalorder %s5071_s6, %s5700_s20 }
 0x14d   : > { %p4449_p4 = scmp.ne.s32.totalorder %s5071_s6, %s4448_s0  ;;  %p4455_p0 = scmp.lt.u32.totalorder %s4453_s12, %s4448_s0 }
 0x14e   : > { %p4457_p5 = scmp.lt.u32.totalorder %s4448_s0, %s5071_s6 }
 0x14f   : > { %p4451_p1 = pnand %p4450_p8, %p4449_p4  ;;  %p4456_p2 = por %p4455_p0, %p4454_p13 }
 0x151   : > { %p4452_p3 = pneg %p4451_p1  ;;  %p4458_p9 = por %p4457_p5, %p4456_p2 }
 0x153   : > { %p4459_p10 = pnand %p4458_p9, %p4452_p3 }
 0x155   : > { %4462 = shalt.err (!%p4459_p10)
}
 0x156   : > { %s4463_s21 = scalar_lea.vmem %s5077_s3, 128  ;;  %s4617_s26 = smov [#allocation4]  }
 0x157   : > { %p4464_p4 = scmp.ne.s32.totalorder %s5077_s3, %s4463_s21  ;;  %s4468_s29 = sshll.u32 %s4617_s26, 4  ;;  %s4469_s29 = int_to_ptr.vmem [resolvable:$false] %s4468_s29 }
 0x158   : > { %s4470_s16 = scalar_lea.vmem %s4469_s29, 256  ;;  %p4471_p6 = scmp.lt.s32.totalorder %s5077_s3, %s4469_s29 }
 0x159   : > { %p4466_p1 = pnand %p4464_p4, %p4450_p8  ;;  %p4472_p13 = scmp.lt.s32.totalorder %s4470_s16, %s4463_s21 }
 0x15b   : > { %p4467_p11 = pneg %p4466_p1  ;;  %p4473_p0 = por %p4472_p13, %p4471_p6 }
 0x15d   : > { %p4474_p2 = pnand %p4473_p0, %p4467_p11 }
 0x15f   : > { %4477 = shalt.err (!%p4474_p2)
}
 0x160   : > { %3998 = dma.hbm_to_vmem [thread:$0]  (!%p5073_p12), %s5071_s6, 128, %s5077_s3, %s677_s30  }
 0x161   : > { %s3454_s0 = sshll.u32 %s4602_s24, 4  ;;  %s5702_s26 = sld [smem:[#allocation38_spill]] }
 0x162   : > { %s697_s21 = scalar_lea.vmem [#allocation7], %s5060_s25  ;;  %s5703_s16 = sand.u32 1, %s4602_s24  }
 0x163   : > { %s704_s29 = sshll.u32 %s697_s21, 4  ;;  %s695_s7 = scalar_lea.sflag [#allocation8], %s5703_s16  ;;  %s705_s29 = int_to_ptr.vmem [resolvable:$true] %s704_s29 }
 0x167   : > { %s5110_s5 = scalar_lea.hbm %s5702_s26, %s3454_s0  ;;  %s4483_s30 = scalar_lea.hbm %s5702_s26, 32 }
 0x168   : > { %s4478_s8 = scalar_lea.hbm %s5110_s5, 16  ;;  %p4484_p5 = scmp.lt.u32.totalorder %s5110_s5, %s5702_s26 }
 0x169   : > { %p4479_p6 = scmp.ne.s32.totalorder %s5110_s5, %s4478_s8  ;;  %p4485_p9 = scmp.lt.u32.totalorder %s4483_s30, %s4478_s8 }
 0x16a   : > { %p4487_p4 = scmp.lt.u32.totalorder %s4478_s8, %s5110_s5 }
 0x16b   : > { %p4481_p11 = pnand %p4479_p6, %p4450_p8  ;;  %p4486_p10 = por %p4485_p9, %p4484_p5 }
 0x16d   : > { %p4482_p3 = pneg %p4481_p11  ;;  %p4488_p1 = por %p4487_p4, %p4486_p10 }
 0x16f   : > { %p4489_p13 = pnand %p4488_p1, %p4482_p3 }
 0x171   : > { %4492 = shalt.err (!%p4489_p13)
}
 0x172   : > { %s4493_s25 = scalar_lea.vmem %s705_s29, 16  ;;  %s4618_s10 = smov [#allocation7]  }
 0x173   : > { %p4494_p0 = scmp.ne.s32.totalorder %s705_s29, %s4493_s25  ;;  %s4498_s21 = sshll.u32 %s4618_s10, 4  ;;  %s4499_s21 = int_to_ptr.vmem [resolvable:$false] %s4498_s21 }
 0x174   : > { %s4500_s16 = scalar_lea.vmem %s4499_s21, 32  ;;  %p4501_p11 = scmp.lt.s32.totalorder %s705_s29, %s4499_s21 }
 0x175   : > { %p4496_p2 = pnand %p4494_p0, %p4450_p8  ;;  %p4502_p7 = scmp.lt.s32.totalorder %s4500_s16, %s4493_s25 }
 0x177   : > { %p4497_p6 = pneg %p4496_p2  ;;  %p4503_p5 = por %p4502_p7, %p4501_p11 }
 0x179   : > { %p4504_p9 = pnand %p4503_p5, %p4497_p6 }
 0x17b   : > { %4507 = shalt.err (!%p4504_p9)
}
 0x17c   : > { %4001 = dma.hbm_to_vmem [thread:$0]  (!%p5073_p12), %s5110_s5, 16, %s705_s29, %s695_s7  }
 0x17d   : > { %s5704_s8 = sld [smem:[#allocation36_spill]] }
 0x183   : > { %p5705_p3 = scmp.ne.s32.totalorder %s5704_s8, 0 }
 0x184   : > { %s5137_s6 = sand.u32 (!%p5705_p3), 1, %s4594_s22   ;;  %p5706_p8 = scmp.ne.s32.totalorder (!%p5705_p3), %s5697_s18, 0 }
 0x185   : > { %713 = sbr.rel (%p5705_p3) target bundleno = 6221 (0x184d), region = 100  ;;  %s3456_s3 = sshll.u32 (!%p5705_p3), %s5137_s6, 3 }
 0x186   : > { %s716_s30 = scalar_lea.sflag (!%p5705_p3), [#allocation5], %s5137_s6  ;;  %s719_s0 = scalar_lea.vmem (!%p5705_p3), [#allocation4], %s3456_s3 }
 0x18c   : > { %4553 = dma.done.wait (%p5706_p8), %s716_s30, 128  }
 0x18d   : > { %4555 = vsyncadd (%p5706_p8), %s716_s30, 4294967168  ;;  %s5707_s27 = sld [smem:[#allocation35_spill]]  ;;  %s727_s29 = scalar_lea.vmem [#allocation7], %s5137_s6 }
 0x193   : > { %s724_s5 = sand.u32 1, %s5707_s27  }
 0x194   : > { %s725_s7 = scalar_lea.sflag [#allocation8], %s724_s5 }
 0x195   : > { %4557 = dma.done.wait (%p5706_p8), %s725_s7, 16  }
 0x196   : > { %4559 = vsyncadd (%p5706_p8), %s725_s7, 4294967280  ;;  %p5708_p7 = scmp.eq.s32.totalorder %s5707_s27, 0 }
 0x198   : > { %4561 = dma.done.wait (%p5708_p7), [#allocation8], 16   ;;  %p5709_p12 = pmov %p5708_p7 }
 0x199   : > { %p5710_p10 = pmov %p5708_p7 }
 0x19a   : > { %4563 = vsyncadd (%p5709_p12), [#allocation8], 4294967280 }
 0x19b   : > { %4565 = dma.done.wait (%p5710_p10), [#allocation11], 48   ;;  %p5711_p4 = pmov %p5708_p7 }
 0x19d   : > { %4567 = vsyncadd (%p5711_p4), [#allocation11], 4294967248  ;;  %p5712_p1 = pmov %p5711_p4 }
 0x19f   : > { %4569 = dma.done.wait (%p5712_p1), [#allocation14], 64   ;;  %p5713_p13 = pmov %p5712_p1 }
 0x1a0   : > { %p5714_p0 = pmov %p5712_p1 }
 0x1a1   : > { %4571 = vsyncadd (%p5713_p13), [#allocation14], 4294967232 }
 0x1a2   : > { %4573 = dma.done.wait (%p5714_p0), [#allocation17], 64   ;;  %p5715_p2 = pmov %p5714_p0 }
 0x1a3   : > { %p5716_p6 = pmov %p5714_p0 }
 0x1a4   : > { %4575 = vsyncadd (%p5715_p2), [#allocation17], 4294967232 }
 0x1a5   : > { %4577 = dma.done.wait (%p5716_p6), [#allocation20], 64   ;;  %p5717_p11 = pmov %p5714_p0 }
 0x1a6   : > { %p5718_p5 = pmov %p5714_p0 }
 0x1a7   : > { %4579 = vsyncadd (%p5717_p11), [#allocation20], 4294967232 }
 0x1a8   : > { %4581 = dma.done.wait (%p5718_p5), [#allocation23], 48   ;;  %p5719_p9 = pmov %p5714_p0 }
 0x1a9   : > { %vm834_vm0 = vcmask 261120   ;;  %v831_v0 = vld [vmem:[%s719_s0] sm:$0xff]  ;;  %s5720_s25 = sld [smem:[#allocation41_spill]]  ;;  %v4619_v10 = vmov 0.0|0.0   ;;  %vm4620_vm1 = vmmov 0   ;;  %v4621_v13 = vmov 0.0  }
 0x1aa   : > { %4583 = vsyncadd (%p5719_p9), [#allocation23], 4294967248  ;;  %v835_v1 = vsel %vm834_vm0, %v831_v0, 0.0  ;;  %3839 = vmatprep.subr.bf16.mxu0 %v4619_v10  ;;  %3641 = vmatprep.mubr.msk.f32.mxu0 %vm4620_vm1, %v4621_v13  ;;  %v3468_v19 = vld [vmem:[#allocation9] ss:$0 sm:$0xff]  ;;  %vm950_vm2 = vcmask 785408   ;;  %v954_v36 = vlaneseq }
 0x1ab   : > { %836 = vadd.xlane.f32.xlu0 %v835_v1  ;;  %3644 = vmatprep.subr.mxu1 %v4621_v13  ;;  %v3469_v21 = vld [vmem:[#allocation10] ss:$0 sm:$0xff]  ;;  %v3470_v24 = vld [vmem:[#allocation12] ss:$0 sm:$0xff]  ;;  %s5662_s0 = smov 120   ;;  %s5663_s5 = smov 96  }
 0x1ac   : > { %3646 = vmatprep.mubr.msk.f32.mxu1 %vm4620_vm1, %v4621_v13  ;;  %s5664_s7 = smov 88   ;;  %s5658_s18 = smov 80   ;;  %vm962_vm3 = vcmask 64512   ;;  %v863_v37 = vld [vmem:[%s727_s29] sm:$0x1]  ;;  %v955_v39 = vshrl.u32 %v954_v36, 7 }
 0x1ad   : > { %s5657_s12 = smov 112   ;;  %s5656_s10 = smov 72   ;;  %v864_v38 = vsub.f32 1.0, %v863_v37  ;;  %vm1296_vm4 = vcmask 130112   ;;  %vm1469_vm5 = vcmask 195712   ;;  %vm1642_vm6 = vcmask 261312  }
 0x1ae   : > { %s5655_s21 = smov 104   ;;  %v956_v41 = vsub.s32 0, %v955_v39  ;;  %s5654_s29 = smov 64   ;;  %vm1867_vm7 = vcmask 523264   ;;  %vm3233_vm8 = vcmask 16384  }
 0x1af   : > { %v866_v7 = vld [vmem:[%s5720_s25] sm:$0xff]  ;;  %v867_v8 = vld [vmem:[%s5720_s25 + $0x8] sm:$0xff]  ;;  %v868_v9 = vld [vmem:[%s5720_s25 + $0x10] sm:$0xff]  ;;  %v865_v40 = vmul.f32 -1e+09, %v864_v38  ;;  %s5653_s16 = smov 48  }
 0x1b0   : > { %v3840_v11 = vpack.c.bf16 %v867_v8, %v866_v7  ;;  %v869_v12 = vld [vmem:[%s5720_s25 + $0x18] sm:$0xff]  ;;  %s5652_s8 = smov 40   ;;  %s5651_s3 = smov 56  }
 0x1b1   : > { %v3843_v14 = vpack.c.bf16 %v869_v12, %v868_v9  ;;  %v5243_v42 = vrot.slane %v865_v40, %v956_v41  ;;  %s5726_s30 = smov 120   ;;  %p5742_p8 = scmp.ne.s32.totalorder %s5698_s2, 0 }
 0x1b2   : > { %3841 = vmatpush3.bf16.msra.mxu0 %v3840_v11 }
 0x1b3   : > { %3842 = vmatprep.subr.bf16.mxu0 %v4619_v10 }
 0x1b6   : > { %3844 = vmatpush3.bf16.msra.mxu0 %v3843_v14 }
 0x1b7   : > { %3654 = vmatprep.subr.mxu0 %v4621_v13 }
 0x238   : > { %v837_v2 = vpop.xlane.xlu0 %836 }
 0x239   : > { %v839_v3 = vmul.f32 0.03125, %v837_v2 }
 0x23b   : > { %v840_v4 = vsub.f32 %v831_v0, %v839_v3 }
 0x23d   : > { %v841_v5 = vmul.f32 %v840_v4, %v840_v4 }
 0x23f   : > { %v842_v6 = vsel %vm834_vm0, %v841_v5, 0.0 }
 0x240   : > { %843 = vadd.xlane.f32.xlu0 %v842_v6 }
 0x2cd   : > { %v844_v15 = vpop.xlane.xlu0 %843 }
 0x2ce   : > { %v845_v16 = vmul.f32 0.03125, %v844_v15 }
 0x2d0   : > { %v846_v17 = vadd.f32 1e-12, %v845_v16 }
 0x2d2   : > { %4092 = vrsqrt.f32 %v846_v17 }
 0x2dc   : > { %v4093_v18 = vpop.eup %4092 }
 0x2dd   : > { %v848_v20 = vmul.f32 %v4093_v18, %v840_v4 }
 0x2df   : > { %v855_v22 = vmul.f32 %v3468_v19, %v848_v20 }
 0x2e1   : > { %v5197_v23 = vadd.f32 %v3469_v21, %v855_v22 }
 0x2e3   : > { %3642 = vmatmul.mubr.msk.f32.vlgmr.msra.gmra.mrb[0].mxu0 %vm834_vm0, %v5197_v23 }
 0x2e4   : > { %3656 = vmatprep.mubr.msk.f32.mxu0 %vm4620_vm1, %v4621_v13 }
 0x3b6   : > { %v946_v25 = vpop.f32.mrb[0].mxu0 }
 0x3b7   : > { %v947_v26 = vadd.f32 %v3470_v24, %v946_v25  ;;  %v3643_v27 = vpop.f32.mrb[1].mxu0 }
 0x3b9   : > { %951 = vst.msk [vmem:[#allocation2] sm:$0xff] %vm950_vm2, %v947_v26 }
 0x3c0   : > { %v5204_v28 = vld [vmem:[#allocation2] sm:$0xff] }
 0x3c1   : > { %1127 = vrot.lane.b32.xlu0 %v5204_v28, %s5662_s0  ;;  %960 = vrot.lane.b32.xlu1 %v5204_v28, %s5663_s5  ;;  %s5727_s0 = smov 80   ;;  %s5732_s5 = smov 48  }
 0x3c5   : > { %1129 = vrot.lane.b32.xlu1 %v5204_v28, %s5664_s7  ;;  %s5725_s7 = smov 96  }
 0x3c9   : > { %1302 = vrot.lane.b32.xlu1 %v5204_v28, %s5658_s18  ;;  %s5659_s18 = smov 24  }
 0x3cd   : > { %1300 = vrot.lane.b32.xlu1 %v5204_v28, %s5657_s12  ;;  %s5730_s12 = smov 104  }
 0x3d1   : > { %1475 = vrot.lane.b32.xlu1 %v5204_v28, %s5656_s10  ;;  %s5731_s10 = smov 64  }
 0x3d5   : > { %1473 = vrot.lane.b32.xlu1 %v5204_v28, %s5655_s21  ;;  %s5722_s21 = sld [smem:[#allocation47_spill]] }
 0x433   : > { %v961_v29 = vpop.permute.xlu1 %960  ;;  %v1128_v31 = vpop.permute.xlu0 %1127 }
 0x434   : > { %3645 = vmatpush3.xpose.msk.msra.mxu1 %vm962_vm3, %v961_v29 }
 0x435   : > { %3649 = vmatprep.subr.mxu1 %v4621_v13 }
 0x437   : > { %3647 = vmatmul.mubr.msk.f32.vlgmr.msra.gmra.mrb[0].mxu1 %vm962_vm3, %v5204_v28  ;;  %v1130_v30 = vpop.permute.xlu1 %1129 }
 0x438   : > { %3655 = vmatpush3.xpose.msk.msra.mxu0 %vm962_vm3, %v1130_v30  ;;  %3651 = vmatprep.mubr.msk.f32.mxu1 %vm4620_vm1, %v4621_v13 }
 0x439   : > { %3664 = vmatprep.subr.mxu0 %v4621_v13 }
 0x43b   : > { %3657 = vmatmul.mubr.msk.f32.vlgmr.msra.gmra.mrb[2].mxu0 %vm962_vm3, %v1128_v31  ;;  %v1303_v32 = vpop.permute.xlu1 %1302 }
 0x43c   : > { %3665 = vmatpush3.xpose.msk.msra.mxu0 %vm962_vm3, %v1303_v32  ;;  %3666 = vmatprep.mubr.msk.f32.mxu0 %vm4620_vm1, %v4621_v13 }
 0x43d   : > { %3674 = vmatprep.subr.mxu0 %v4621_v13 }
 0x43f   : > { %v1301_v33 = vpop.permute.xlu1 %1300 }
 0x440   : > { %3667 = vmatmul.mubr.msk.f32.vlgmr.msra.gmra.mrb[4].mxu0 %vm962_vm3, %v1301_v33 }
 0x441   : > { %3676 = vmatprep.mubr.msk.f32.mxu0 %vm4620_vm1, %v4621_v13 }
 0x443   : > { %v1476_v34 = vpop.permute.xlu1 %1475 }
 0x444   : > { %3675 = vmatpush3.xpose.msk.msra.mxu0 %vm962_vm3, %v1476_v34 }
 0x445   : > { %3845 = vmatprep.subr.bf16.mxu0 %v4619_v10 }
 0x447   : > { %v1474_v35 = vpop.permute.xlu1 %1473 }
 0x448   : > { %3677 = vmatmul.mubr.msk.f32.vlgmr.msra.gmra.mrb[6].mxu0 %vm962_vm3, %v1474_v35 }
 0x449   : > { %3692 = vmatprep.mubr.msk.f32.mxu0 %vm4620_vm1, %v4621_v13 }
 0x50a   : > { %v1033_v43 = vpop.f32.mrb[0].mxu1 }
 0x50b   : > { %v1034_v44 = vadd.f32 %v1033_v43, %v5243_v42  ;;  %v3648_v45 = vpop.f32.mrb[1].mxu1 }
 0x50d   : > { %v1037_v46 = vsel %vm962_vm3, %v1034_v44, -inf }
 0x50e   : > { %1038 = vmax.xlane.f32.xlu1 %v1037_v46  ;;  %v1201_v47 = vpop.f32.mrb[2].mxu0 }
 0x50f   : > { %v1202_v48 = vadd.f32 %v1201_v47, %v5243_v42  ;;  %v3658_v49 = vpop.f32.mrb[3].mxu0 }
 0x511   : > { %v1205_v50 = vsel %vm962_vm3, %v1202_v48, -inf }
 0x512   : > { %1206 = vmax.xlane.f32.xlu0 %v1205_v50 }
 0x513   : > { %v1374_v51 = vpop.f32.mrb[4].mxu0 }
 0x514   : > { %v1375_v52 = vadd.f32 %v1374_v51, %v5243_v42  ;;  %v3668_v53 = vpop.f32.mrb[5].mxu0 }
 0x515   : > { %v3484_v53 = vld [vmem:[#allocation13] ss:$0 sm:$0xff] }
 0x516   : > { %v1378_v54 = vsel %vm962_vm3, %v1375_v52, -inf }
 0x517   : > { %1379 = vmax.xlane.f32.xlu1 %v1378_v54 }
 0x51b   : > { %v1547_v55 = vpop.f32.mrb[6].mxu0 }
 0x51c   : > { %v1548_v56 = vadd.f32 %v1547_v55, %v5243_v42  ;;  %v3678_v57 = vpop.f32.mrb[7].mxu0 }
 0x51e   : > { %v1551_v58 = vsel %vm962_vm3, %v1548_v56, -inf }
 0x51f   : > { %1552 = vmax.xlane.f32.xlu0 %v1551_v58 }
 0x528   : > { %1048 = vrot.lane.b32.xlu1 %v5204_v28, %s5654_s29  ;;  %s5660_s29 = smov 16  }
 0x59b   : > { %v1039_v59 = vpop.xlane.xlu1 %1038 }
 0x59c   : > { %v1040_v60 = vsub.f32 %v1034_v44, %v1039_v59 }
 0x59e   : > { %v1041_v61 = vmul.f32 1.442695, %v1040_v60 }
 0x59f   : > { %v1207_v62 = vpop.xlane.xlu0 %1206 }
 0x5a0   : > { %4094 = vpow2.f32 %v1041_v61  ;;  %v1208_v63 = vsub.f32 %v1202_v48, %v1207_v62 }
 0x5a2   : > { %v1209_v0 = vmul.f32 1.442695, %v1208_v63 }
 0x5a4   : > { %4096 = vpow2.f32 %v1209_v0  ;;  %v1380_v1 = vpop.xlane.xlu1 %1379  ;;  %v1759_v0 = vld [vmem:[%s5722_s21] sm:$0xff] }
 0x5a5   : > { %v1381_v2 = vsub.f32 %v1375_v52, %v1380_v1  ;;  %v1760_v1 = vld [vmem:[%s5722_s21 + $0x8] sm:$0xff] }
 0x5a7   : > { %v1382_v3 = vmul.f32 1.442695, %v1381_v2  ;;  %v3852_v2 = vpack.c.bf16 %v1760_v1, %v1759_v0  ;;  %v3492_v0 = vld [vmem:[#allocation21] ss:$0 sm:$0xff] }
 0x5a8   : > { %v1049_v4 = vpop.permute.xlu1 %1048 }
 0x5a9   : > { %4098 = vpow2.f32 %v1382_v3  ;;  %3650 = vmatpush3.msra.mxu1 %v1049_v4  ;;  %v1762_v3 = vld [vmem:[%s5722_s21 + $0x18] sm:$0xff] }
 0x5aa   : > { %v4095_v5 = vpop.eup %4094  ;;  %3659 = vmatprep.subr.mxu1 %v4621_v13 }
 0x5ab   : > { %v1043_v6 = vsel %vm962_vm3, %v4095_v5, 0.0 }
 0x5ac   : > { %1044 = vadd.xlane.f32.xlu1 %v1043_v6  ;;  %v1553_v7 = vpop.xlane.xlu0 %1552 }
 0x5ad   : > { %v1554_v8 = vsub.f32 %v1548_v56, %v1553_v7 }
 0x5ae   : > { %v4097_v9 = vpop.eup %4096 }
 0x5af   : > { %v1555_v11 = vmul.f32 1.442695, %v1554_v8  ;;  %v1211_v12 = vsel %vm962_vm3, %v4097_v9, 0.0 }
 0x5b0   : > { %1212 = vadd.xlane.f32.xlu0 %v1211_v12  ;;  %v3487_v12 = vld [vmem:[#allocation16] ss:$0 sm:$0xff] }
 0x5b1   : > { %4100 = vpow2.f32 %v1555_v11 }
 0x5b3   : > { %v4099_v14 = vpop.eup %4098 }
 0x5b4   : > { %v1384_v15 = vsel %vm962_vm3, %v4099_v14, 0.0 }
 0x5b5   : > { %1385 = vadd.xlane.f32.xlu1 %v1384_v15 }
 0x5bb   : > { %v4101_v16 = vpop.eup %4100 }
 0x5bc   : > { %v1557_v17 = vsel %vm962_vm3, %v4101_v16, 0.0 }
 0x5bd   : > { %1558 = vadd.xlane.f32.xlu0 %v1557_v17 }
 0x5c6   : > { %1389 = vrot.lane.b32.xlu1 %v5204_v28, %s5653_s16  ;;  %s5724_s16 = smov 88  }
 0x5ca   : > { %1562 = vrot.lane.b32.xlu1 %v5204_v28, %s5652_s8  ;;  %s5721_s8 = sld [smem:[#allocation43_spill]] }
 0x5d0   : > { %v1645_v36 = vld [vmem:[%s5721_s8] sm:$0xff]  ;;  %v1646_v37 = vld [vmem:[%s5721_s8 + $0x8] sm:$0xff]  ;;  %v1647_v39 = vld [vmem:[%s5721_s8 + $0x10] sm:$0xff] }
 0x5d1   : > { %v3846_v38 = vpack.c.bf16 %v1646_v37, %v1645_v36  ;;  %v1648_v40 = vld [vmem:[%s5721_s8 + $0x18] sm:$0xff] }
 0x5d2   : > { %v3849_v41 = vpack.c.bf16 %v1648_v40, %v1647_v39 }
 0x5d3   : > { %1216 = vrot.lane.b32.xlu0 %v5204_v28, %s5651_s3  ;;  %3847 = vmatpush3.bf16.msra.mxu0 %v3846_v38  ;;  %s5661_s3 = smov 8  }
 0x5d4   : > { %3848 = vmatprep.subr.bf16.mxu0 %v4619_v10 }
 0x5d7   : > { %3850 = vmatpush3.bf16.msra.mxu0 %v3849_v41 }
 0x5d8   : > { %3857 = vmatprep.subr.bf16.mxu0 %v4619_v10 }
 0x639   : > { %v1045_v18 = vpop.xlane.xlu1 %1044 }
 0x63a   : > { %4102 = vrcp.f32 %v1045_v18 }
 0x63d   : > { %v1213_v19 = vpop.xlane.xlu0 %1212 }
 0x63e   : > { %4104 = vrcp.f32 %v1213_v19 }
 0x642   : > { %v1386_v20 = vpop.xlane.xlu1 %1385 }
 0x643   : > { %4106 = vrcp.f32 %v1386_v20 }
 0x644   : > { %v4103_v21 = vpop.eup %4102 }
 0x645   : > { %v1047_v22 = vmul.f32 %v4103_v21, %v4095_v5 }
 0x646   : > { %v1390_v27 = vpop.permute.xlu1 %1389 }
 0x647   : > { %3652 = vmatmul.mubr.msk.f32.vlgmr.msra.gmra.mrb[2].mxu1 %vm962_vm3, %v1047_v22 }
 0x648   : > { %3661 = vmatprep.mubr.msk.f32.mxu1 %vm4620_vm1, %v4621_v13  ;;  %v4105_v25 = vpop.eup %4104 }
 0x649   : > { %v1215_v26 = vmul.f32 %v4105_v25, %v4097_v9  ;;  %v3486_v9 = vld [vmem:[#allocation15] ss:$0 sm:$0xff] }
 0x64a   : > { %v1559_v24 = vpop.xlane.xlu0 %1558  ;;  %v1563_v31 = vpop.permute.xlu1 %1562 }
 0x64b   : > { %4108 = vrcp.f32 %v1559_v24 }
 0x64d   : > { %v4107_v28 = vpop.eup %4106 }
 0x64e   : > { %v1217_v29 = vpop.permute.xlu0 %1216  ;;  %v1388_v30 = vmul.f32 %v4107_v28, %v4099_v14  ;;  %v3488_v28 = vld [vmem:[#allocation18] ss:$0 sm:$0xff] }
 0x64f   : > { %3660 = vmatpush3.msra.mxu1 %v1217_v29 }
 0x650   : > { %3662 = vmatmul.mubr.msk.f32.vlgmr.msra.gmra.mrb[4].mxu1 %vm962_vm3, %v1215_v26  ;;  %3669 = vmatprep.subr.mxu1 %v4621_v13 }
 0x651   : > { %3670 = vmatpush3.msra.mxu1 %v1390_v27  ;;  %3671 = vmatprep.mubr.msk.f32.mxu1 %vm4620_vm1, %v4621_v13 }
 0x652   : > { %3679 = vmatprep.subr.mxu1 %v4621_v13 }
 0x654   : > { %3672 = vmatmul.mubr.msk.f32.vlgmr.msra.gmra.mrb[6].mxu1 %vm962_vm3, %v1388_v30 }
 0x655   : > { %v4109_v32 = vpop.eup %4108  ;;  %3680 = vmatpush3.msra.mxu1 %v1563_v31  ;;  %3681 = vmatprep.mubr.msk.f32.mxu1 %vm4620_vm1, %v4621_v13 }
 0x656   : > { %v1561_v33 = vmul.f32 %v4109_v32, %v4101_v16  ;;  %3851 = vmatprep.subr.bf16.mxu1 %v4619_v10 }
 0x658   : > { %3682 = vmatmul.mubr.msk.f32.vlgmr.msra.gmra.mrb[8].mxu1 %vm962_vm3, %v1561_v33 }
 0x659   : > { %3703 = vmatprep.mubr.msk.f32.mxu1 %vm4620_vm1, %v4621_v13  ;;  %3853 = vmatpush3.bf16.msra.mxu1 %v3852_v2  ;;  %v3493_v2 = vld [vmem:[#allocation22] ss:$0 sm:$0xff] }
 0x65a   : > { %3854 = vmatprep.subr.bf16.mxu1 %v4619_v10 }
 0x71a   : > { %v1120_v34 = vpop.f32.mrb[2].mxu1 }
 0x71b   : > { %1124 = vst.msk [vmem:[#allocation3] sm:$0xff] %vm962_vm3, %v1120_v34  ;;  %v3653_v35 = vpop.f32.mrb[3].mxu1 }
 0x723   : > { %v1288_v43 = vpop.f32.mrb[4].mxu1 }
 0x724   : > { %1293 = vrot.lane.b32.xlu0 %v1288_v43, %s5661_s3  ;;  %v3663_v44 = vpop.f32.mrb[5].mxu1  ;;  %v3490_v43 = vld [vmem:[#allocation19] ss:$0 sm:$0xff]  ;;  %s5728_s3 = smov 112  }
 0x727   : > { %v1461_v45 = vpop.f32.mrb[6].mxu1 }
 0x728   : > { %1466 = vrot.lane.b32.xlu1 %v1461_v45, %s5660_s29  ;;  %v3673_v46 = vpop.f32.mrb[7].mxu1  ;;  %s5723_s29 = sld [smem:[#allocation48_spill]] }
 0x72b   : > { %v1634_v47 = vpop.f32.mrb[8].mxu1 }
 0x72c   : > { %1639 = vrot.lane.b32.xlu0 %v1634_v47, %s5659_s18  ;;  %v3683_v48 = vpop.f32.mrb[9].mxu1  ;;  %s5729_s18 = smov 72  }
 0x72e   : > { %v1852_v16 = vld [vmem:[%s5723_s29] sm:$0xff]  ;;  %v1853_v17 = vld [vmem:[%s5723_s29 + $0x8] sm:$0xff]  ;;  %v1854_v19 = vld [vmem:[%s5723_s29 + $0x10] sm:$0xff] }
 0x72f   : > { %v3858_v18 = vpack.c.bf16 %v1853_v17, %v1852_v16  ;;  %v1855_v20 = vld [vmem:[%s5723_s29 + $0x18] sm:$0xff]  ;;  %v1856_v22 = vld [vmem:[%s5723_s29 + $0x20] sm:$0xff]  ;;  %v1857_v24 = vld [vmem:[%s5723_s29 + $0x28] sm:$0xff] }
 0x730   : > { %v3861_v21 = vpack.c.bf16 %v1855_v20, %v1854_v19  ;;  %v3864_v25 = vpack.c.bf16 %v1857_v24, %v1856_v22  ;;  %v1858_v26 = vld [vmem:[%s5723_s29 + $0x30] sm:$0xff]  ;;  %v1859_v27 = vld [vmem:[%s5723_s29 + $0x38] sm:$0xff] }
 0x731   : > { %v3867_v29 = vpack.c.bf16 %v1859_v27, %v1858_v26 }
 0x796   : > { %v1294_v49 = vpop.permute.xlu0 %1293 }
 0x797   : > { %1297 = vst.msk [vmem:[#allocation3] sm:$0xff] %vm1296_vm4, %v1294_v49 }
 0x79a   : > { %v1467_v50 = vpop.permute.xlu1 %1466 }
 0x79b   : > { %1470 = vst.msk [vmem:[#allocation3] sm:$0xff] %vm1469_vm5, %v1467_v50 }
 0x79e   : > { %v1640_v51 = vpop.permute.xlu0 %1639 }
 0x79f   : > { %1643 = vst.msk [vmem:[#allocation3] sm:$0xff] %vm1642_vm6, %v1640_v51 }
 0x7a6   : > { %v1644_v52 = vld [vmem:[#allocation3] sm:$0xff] }
 0x7a7   : > { %3693 = vmatmul.mubr.msk.f32.vlgmr.msra.gmra.mrb[8].mxu0 %vm834_vm0, %v1644_v52 }
 0x7a8   : > { %3722 = vmatprep.mubr.msk.f32.mxu0 %vm4620_vm1, %v4621_v13  ;;  %3859 = vmatpush3.bf16.msra.mxu0 %v3858_v18 }
 0x7a9   : > { %3860 = vmatprep.subr.bf16.mxu0 %v4619_v10 }
 0x7ac   : > { %3862 = vmatpush3.bf16.msra.mxu0 %v3861_v21 }
 0x7ad   : > { %3863 = vmatprep.subr.bf16.mxu0 %v4619_v10 }
 0x7b0   : > { %3865 = vmatpush3.bf16.msra.mxu0 %v3864_v25 }
 0x7b1   : > { %3866 = vmatprep.subr.bf16.mxu0 %v4619_v10 }
 0x7b4   : > { %3868 = vmatpush3.bf16.msra.mxu0 %v3867_v29 }
 0x7b5   : > { %3746 = vmatprep.subr.mxu0 %v4621_v13 }
 0x87a   : > { %v1725_v54 = vpop.f32.mrb[8].mxu0 }
 0x87b   : > { %v1726_v55 = vadd.f32 %v3484_v53, %v1725_v54  ;;  %v3694_v56 = vpop.f32.mrb[9].mxu0  ;;  %v3494_v54 = vld [vmem:[%s5720_s25 + $0x20] sm:$0xff] }
 0x87d   : > { %v1729_v57 = vadd.f32 %v1726_v55, %v5197_v23  ;;  %v1761_v23 = vld [vmem:[%s5722_s21 + $0x10] sm:$0xff]  ;;  %v3495_v55 = vld [vmem:[%s5720_s25 + $0x28] sm:$0xff] }
 0x87e   : > { %v3855_v4 = vpack.c.bf16 %v1762_v3, %v1761_v23  ;;  %v3870_v56 = vpack.c.bf16 %v3495_v55, %v3494_v54 }
 0x87f   : > { %v1732_v58 = vsel %vm834_vm0, %v1729_v57, 0.0 }
 0x880   : > { %1733 = vadd.xlane.f32.xlu1 %v1732_v58  ;;  %3856 = vmatpush3.bf16.msra.mxu1 %v3855_v4  ;;  %v3497_v58 = vld [vmem:[%s5720_s25 + $0x38] sm:$0xff]  ;;  %v3498_v4 = vld [vmem:[#allocation12 + $0x1] ss:$0 sm:$0xff] }
 0x881   : > { %3869 = vmatprep.subr.bf16.mxu1 %v4619_v10 }
 0x90d   : > { %v1734_v59 = vpop.xlane.xlu1 %1733 }
 0x90e   : > { %v1735_v60 = vmul.f32 0.03125, %v1734_v59 }
 0x910   : > { %v1736_v61 = vsub.f32 %v1729_v57, %v1735_v60  ;;  %v3496_v57 = vld [vmem:[%s5720_s25 + $0x30] sm:$0xff] }
 0x911   : > { %v3873_v59 = vpack.c.bf16 %v3497_v58, %v3496_v57 }
 0x912   : > { %v1737_v62 = vmul.f32 %v1736_v61, %v1736_v61 }
 0x914   : > { %v1738_v63 = vsel %vm834_vm0, %v1737_v62, 0.0 }
 0x915   : > { %1739 = vadd.xlane.f32.xlu0 %v1738_v63 }
 0x9a2   : > { %v1740_v5 = vpop.xlane.xlu0 %1739 }
 0x9a3   : > { %v1741_v6 = vmul.f32 0.03125, %v1740_v5 }
 0x9a5   : > { %v1742_v7 = vadd.f32 1e-12, %v1741_v6 }
 0x9a7   : > { %4110 = vrsqrt.f32 %v1742_v7 }
 0x9b1   : > { %v4111_v8 = vpop.eup %4110 }
 0x9b2   : > { %v1744_v11 = vmul.f32 %v4111_v8, %v1736_v61 }
 0x9b4   : > { %v1751_v14 = vmul.f32 %v3486_v9, %v1744_v11 }
 0x9b6   : > { %v1758_v15 = vadd.f32 %v3487_v12, %v1751_v14 }
 0x9b8   : > { %3704 = vmatmul.mubr.msk.f32.vlgmr.msra.gmra.mrb[10].mxu1 %vm834_vm0, %v1758_v15 }
 0x9b9   : > { %3733 = vmatprep.mubr.msk.f32.mxu1 %vm4620_vm1, %v4621_v13  ;;  %3871 = vmatpush3.bf16.msra.mxu1 %v3870_v56 }
 0x9ba   : > { %3872 = vmatprep.subr.bf16.mxu1 %v4619_v10 }
 0x9bd   : > { %3874 = vmatpush3.bf16.msra.mxu1 %v3873_v59 }
 0x9be   : > { %3736 = vmatprep.subr.mxu1 %v4621_v13 }
 0xa8b   : > { %v1839_v30 = vpop.f32.mrb[10].mxu1 }
 0xa8c   : > { %v1840_v31 = vadd.f32 %v3488_v28, %v1839_v30  ;;  %v3705_v32 = vpop.f32.mrb[11].mxu1 }
 0xa8e   : > { %v1844_v33 = vmul.f32 0.044715, %v1840_v31  ;;  %v1843_v39 = vmul.f32 0.5, %v1840_v31 }
 0xa90   : > { %v1845_v34 = vmul.f32 %v1844_v33, %v1840_v31 }
 0xa92   : > { %v1846_v35 = vmul.f32 %v1845_v34, %v1840_v31 }
 0xa94   : > { %v1847_v36 = vadd.f32 %v1846_v35, %v1840_v31 }
 0xa96   : > { %v1848_v37 = vmul.f32 0.7978846, %v1847_v36 }
 0xa98   : > { %4112 = vtanh.f32 %v1848_v37 }
 0xaa2   : > { %v4113_v38 = vpop.eup %4112 }
 0xaa3   : > { %v1850_v40 = vadd.f32 1.0, %v4113_v38 }
 0xaa5   : > { %v1851_v41 = vmul.f32 %v1850_v40, %v1843_v39 }
 0xaa7   : > { %3723 = vmatmul.mubr.msk.f32.vlgmr.msra.gmra.mrb[10].mxu0 %vm1867_vm7, %v1851_v41 }
 0xaa8   : > { %3748 = vmatprep.mubr.msk.f32.mxu0 %vm4620_vm1, %v4621_v13 }
 0xb7a   : > { %v1937_v44 = vpop.f32.mrb[10].mxu0 }
 0xb7b   : > { %v1938_v45 = vadd.f32 %v3490_v43, %v1937_v44  ;;  %v3724_v46 = vpop.f32.mrb[11].mxu0 }
 0xb7d   : > { %v1941_v47 = vadd.f32 %v1938_v45, %v1758_v15 }
 0xb7f   : > { %v1944_v48 = vsel %vm834_vm0, %v1941_v47, 0.0 }
 0xb80   : > { %1945 = vadd.xlane.f32.xlu0 %v1944_v48 }
 0xc0d   : > { %v1946_v49 = vpop.xlane.xlu0 %1945 }
 0xc0e   : > { %v1947_v50 = vmul.f32 0.03125, %v1946_v49 }
 0xc10   : > { %v1948_v51 = vsub.f32 %v1941_v47, %v1947_v50 }
 0xc12   : > { %v1949_v52 = vmul.f32 %v1948_v51, %v1948_v51 }
 0xc14   : > { %v1950_v53 = vsel %vm834_vm0, %v1949_v52, 0.0 }
 0xc15   : > { %1951 = vadd.xlane.f32.xlu1 %v1950_v53 }
 0xca2   : > { %v1952_v60 = vpop.xlane.xlu1 %1951 }
 0xca3   : > { %v1953_v61 = vmul.f32 0.03125, %v1952_v60 }
 0xca5   : > { %v1954_v62 = vadd.f32 1e-12, %v1953_v61 }
 0xca7   : > { %4114 = vrsqrt.f32 %v1954_v62 }
 0xcb1   : > { %v4115_v63 = vpop.eup %4114 }
 0xcb2   : > { %v1956_v1 = vmul.f32 %v4115_v63, %v1948_v51 }
 0xcb4   : > { %v1963_v23 = vmul.f32 %v3492_v0, %v1956_v1 }
 0xcb6   : > { %v5372_v3 = vadd.f32 %v3493_v2, %v1963_v23 }
 0xcb8   : > { %3734 = vmatmul.mubr.msk.f32.vlgmr.msra.gmra.mrb[12].mxu1 %vm834_vm0, %v5372_v3 }
 0xcb9   : > { %3738 = vmatprep.mubr.msk.f32.mxu1 %vm4620_vm1, %v4621_v13 }
 0xd8b   : > { %v2053_v5 = vpop.f32.mrb[12].mxu1 }
 0xd8c   : > { %v2054_v6 = vadd.f32 %v3498_v4, %v2053_v5  ;;  %v3735_v7 = vpop.f32.mrb[13].mxu1 }
 0xd8d   : > { %v3512_v7 = vld [vmem:[%s5721_s8 + $0x20] sm:$0xff] }
 0xd8e   : > { %2057 = vst.msk [vmem:[#allocation2] sm:$0xff] %vm950_vm2, %v2054_v6 }
 0xd95   : > { %v5379_v8 = vld [vmem:[#allocation2] sm:$0xff] }
 0xd96   : > { %2228 = vrot.lane.b32.xlu1 %v5379_v8, %s5724_s16  ;;  %2060 = vrot.lane.b32.xlu0 %v5379_v8, %s5725_s7  ;;  %s5733_s16 = smov 40   ;;  %s5734_s7 = smov 56  }
 0xd9a   : > { %2226 = vrot.lane.b32.xlu1 %v5379_v8, %s5726_s30  ;;  %2400 = vrot.lane.b32.xlu0 %v5379_v8, %s5727_s0  ;;  %s5736_s30 = smov 16   ;;  %s5737_s0 = smov 24  }
 0xd9e   : > { %2398 = vrot.lane.b32.xlu1 %v5379_v8, %s5728_s3  ;;  %2572 = vrot.lane.b32.xlu0 %v5379_v8, %s5729_s18  ;;  %s5739_s3 = sld [smem:[#allocation50_spill]]  ;;  %s5740_s18 = sld [smem:[#allocation51_spill]] }
 0xda2   : > { %2570 = vrot.lane.b32.xlu1 %v5379_v8, %s5730_s12  ;;  %s830_s12 = scalar_lea.vmem [#allocation25], %s5137_s6 }
 0xe08   : > { %v2229_v9 = vpop.permute.xlu1 %2228  ;;  %v2061_v11 = vpop.permute.xlu0 %2060 }
 0xe09   : > { %3737 = vmatpush3.xpose.msk.msra.mxu1 %vm962_vm3, %v2061_v11  ;;  %3747 = vmatpush3.xpose.msk.msra.mxu0 %vm962_vm3, %v2229_v9 }
 0xe0a   : > { %3756 = vmatprep.subr.mxu0 %v4621_v13  ;;  %3741 = vmatprep.subr.mxu1 %v4621_v13 }
 0xe0c   : > { %v2227_v12 = vpop.permute.xlu1 %2226  ;;  %3739 = vmatmul.mubr.msk.f32.vlgmr.msra.gmra.mrb[14].mxu1 %vm962_vm3, %v5379_v8  ;;  %v2401_v14 = vpop.permute.xlu0 %2400 }
 0xe0d   : > { %3749 = vmatmul.mubr.msk.f32.vlgmr.msra.gmra.mrb[12].mxu0 %vm962_vm3, %v2227_v12  ;;  %3743 = vmatprep.mubr.msk.f32.mxu1 %vm4620_vm1, %v4621_v13  ;;  %v3514_v12 = vld [vmem:[%s5721_s8 + $0x30] sm:$0xff] }
 0xe0e   : > { %3757 = vmatpush3.xpose.msk.msra.mxu0 %vm962_vm3, %v2401_v14  ;;  %3758 = vmatprep.mubr.msk.f32.mxu0 %vm4620_vm1, %v4621_v13  ;;  %v3515_v14 = vld [vmem:[%s5721_s8 + $0x38] sm:$0xff] }
 0xe0f   : > { %3766 = vmatprep.subr.mxu0 %v4621_v13 }
 0xe10   : > { %v2399_v15 = vpop.permute.xlu1 %2398  ;;  %v2573_v16 = vpop.permute.xlu0 %2572 }
 0xe11   : > { %3759 = vmatmul.mubr.msk.f32.vlgmr.msra.gmra.mrb[14].mxu0 %vm962_vm3, %v2399_v15 }
 0xe12   : > { %3767 = vmatpush3.xpose.msk.msra.mxu0 %vm962_vm3, %v2573_v16  ;;  %3768 = vmatprep.mubr.msk.f32.mxu0 %vm4620_vm1, %v4621_v13  ;;  %v3879_v16 = vpack.c.bf16 %v3515_v14, %v3514_v12 }
 0xe13   : > { %3875 = vmatprep.subr.bf16.mxu0 %v4619_v10 }
 0xe14   : > { %v2571_v17 = vpop.permute.xlu1 %2570 }
 0xe15   : > { %3769 = vmatmul.mubr.msk.f32.vlgmr.msra.gmra.mrb[16].mxu0 %vm962_vm3, %v2571_v17 }
 0xe16   : > { %3784 = vmatprep.mubr.msk.f32.mxu0 %vm4620_vm1, %v4621_v13 }
 0xedf   : > { %v2132_v18 = vpop.f32.mrb[14].mxu1 }
 0xee0   : > { %v2133_v19 = vadd.f32 %v2132_v18, %v5243_v42  ;;  %v3740_v20 = vpop.f32.mrb[15].mxu1  ;;  %v2300_v21 = vpop.f32.mrb[12].mxu0 }
 0xee1   : > { %v2301_v22 = vadd.f32 %v2300_v21, %v5243_v42  ;;  %v3750_v24 = vpop.f32.mrb[13].mxu0 }
 0xee2   : > { %v2136_v25 = vsel %vm962_vm3, %v2133_v19, -inf }
 0xee3   : > { %2137 = vmax.xlane.f32.xlu0 %v2136_v25  ;;  %v2304_v26 = vsel %vm962_vm3, %v2301_v22, -inf }
 0xee4   : > { %2305 = vmax.xlane.f32.xlu1 %v2304_v26  ;;  %v2472_v27 = vpop.f32.mrb[14].mxu0 }
 0xee5   : > { %v2473_v29 = vadd.f32 %v2472_v27, %v5243_v42  ;;  %v3760_v28 = vpop.f32.mrb[15].mxu0 }
 0xee7   : > { %v2476_v30 = vsel %vm962_vm3, %v2473_v29, -inf }
 0xee8   : > { %2477 = vmax.xlane.f32.xlu0 %v2476_v30  ;;  %v2644_v31 = vpop.f32.mrb[16].mxu0 }
 0xee9   : > { %v2645_v32 = vadd.f32 %v2644_v31, %v5243_v42  ;;  %v3770_v33 = vpop.f32.mrb[17].mxu0 }
 0xeeb   : > { %v2648_v34 = vsel %vm962_vm3, %v2645_v32, -inf }
 0xeec   : > { %2649 = vmax.xlane.f32.xlu0 %v2648_v34 }
 0xef5   : > { %2147 = vrot.lane.b32.xlu1 %v5379_v8, %s5731_s10  ;;  %s3248_s10 = sshll.u32 %s830_s12, 4  ;;  %s5567_s10 = int_to_ptr.vmem [resolvable:$true] %s3248_s10 }
 0xf70   : > { %v2138_v35 = vpop.xlane.xlu0 %2137 }
 0xf71   : > { %v2139_v36 = vsub.f32 %v2133_v19, %v2138_v35  ;;  %v2306_v37 = vpop.xlane.xlu1 %2305 }
 0xf72   : > { %v2307_v38 = vsub.f32 %v2301_v22, %v2306_v37 }
 0xf73   : > { %v2140_v39 = vmul.f32 1.442695, %v2139_v36 }
 0xf74   : > { %v2308_v40 = vmul.f32 1.442695, %v2307_v38 }
 0xf75   : > { %4116 = vpow2.f32 %v2140_v39  ;;  %v2148_v41 = vpop.permute.xlu1 %2147  ;;  %v2478_v43 = vpop.xlane.xlu0 %2477  ;;  %v3520_v39 = vld [vmem:[%s5722_s21 + $0x20] sm:$0xff] }
 0xf76   : > { %4118 = vpow2.f32 %v2308_v40  ;;  %v2479_v44 = vsub.f32 %v2473_v29, %v2478_v43  ;;  %3742 = vmatpush3.msra.mxu1 %v2148_v41  ;;  %v3516_v29 = vld [vmem:[#allocation13 + $0x1] ss:$0 sm:$0xff]  ;;  %v3523_v43 = vld [vmem:[%s5722_s21 + $0x38] sm:$0xff] }
 0xf77   : > { %3751 = vmatprep.subr.mxu1 %v4621_v13  ;;  %v3521_v40 = vld [vmem:[%s5722_s21 + $0x28] sm:$0xff] }
 0xf78   : > { %v2480_v42 = vmul.f32 1.442695, %v2479_v44  ;;  %v3882_v41 = vpack.c.bf16 %v3521_v40, %v3520_v39  ;;  %v3537_v40 = vld [vmem:[#allocation22 + $0x1] ss:$0 sm:$0xff] }
 0xf79   : > { %v2650_v45 = vpop.xlane.xlu0 %2649 }
 0xf7a   : > { %4120 = vpow2.f32 %v2480_v42  ;;  %v2651_v46 = vsub.f32 %v2645_v32, %v2650_v45 }
 0xf7c   : > { %v2652_v47 = vmul.f32 1.442695, %v2651_v46 }
 0xf7e   : > { %4122 = vpow2.f32 %v2652_v47 }
 0xf7f   : > { %v4117_v48 = vpop.eup %4116 }
 0xf80   : > { %v4119_v49 = vpop.eup %4118  ;;  %v2142_v50 = vsel %vm962_vm3, %v4117_v48, 0.0 }
 0xf81   : > { %2143 = vadd.xlane.f32.xlu1 %v2142_v50  ;;  %v2310_v51 = vsel %vm962_vm3, %v4119_v49, 0.0  ;;  %v3519_v50 = vld [vmem:[#allocation16 + $0x1] ss:$0 sm:$0xff] }
 0xf82   : > { %2311 = vadd.xlane.f32.xlu0 %v2310_v51 }
 0xf84   : > { %v4121_v52 = vpop.eup %4120 }
 0xf85   : > { %v2482_v53 = vsel %vm962_vm3, %v4121_v52, 0.0 }
 0xf86   : > { %2483 = vadd.xlane.f32.xlu1 %v2482_v53  ;;  %v3526_v53 = vld [vmem:[%s5723_s29 + $0x40] sm:$0xff] }
 0xf88   : > { %v4123_v54 = vpop.eup %4122 }
 0xf89   : > { %v2654_v55 = vsel %vm962_vm3, %v4123_v54, 0.0 }
 0xf8a   : > { %2655 = vadd.xlane.f32.xlu0 %v2654_v55 }
 0xf97   : > { %2487 = vrot.lane.b32.xlu1 %v5379_v8, %s5732_s5 }
 0xf9b   : > { %2659 = vrot.lane.b32.xlu1 %v5379_v8, %s5733_s16 }
 0xfa0   : > { %2315 = vrot.lane.b32.xlu0 %v5379_v8, %s5734_s7  ;;  %v3513_v8 = vld [vmem:[%s5721_s8 + $0x28] sm:$0xff]  ;;  %s5735_s7 = smov 8  }
 0xfa1   : > { %v3876_v11 = vpack.c.bf16 %v3513_v8, %v3512_v7 }
 0xfa3   : > { %3877 = vmatpush3.bf16.msra.mxu0 %v3876_v11 }
 0xfa4   : > { %3878 = vmatprep.subr.bf16.mxu0 %v4619_v10 }
 0xfa7   : > { %3880 = vmatpush3.bf16.msra.mxu0 %v3879_v16  ;;  %v3534_v16 = vld [vmem:[#allocation19 + $0x1] ss:$0 sm:$0xff] }
 0xfa8   : > { %3887 = vmatprep.subr.bf16.mxu0 %v4619_v10 }
0x100e   : > { %v2144_v56 = vpop.xlane.xlu1 %2143 }
0x100f   : > { %4124 = vrcp.f32 %v2144_v56  ;;  %v2312_v57 = vpop.xlane.xlu0 %2311  ;;  %v3528_v56 = vld [vmem:[%s5723_s29 + $0x50] sm:$0xff] }
0x1010   : > { %4126 = vrcp.f32 %v2312_v57  ;;  %v3529_v57 = vld [vmem:[%s5723_s29 + $0x58] sm:$0xff] }
0x1013   : > { %v2484_v58 = vpop.xlane.xlu1 %2483 }
0x1014   : > { %4128 = vrcp.f32 %v2484_v58  ;;  %v3891_v58 = vpack.c.bf16 %v3529_v57, %v3528_v56 }
0x1017   : > { %v2656_v59 = vpop.xlane.xlu0 %2655  ;;  %v2488_v1 = vpop.permute.xlu1 %2487 }
0x1018   : > { %4130 = vrcp.f32 %v2656_v59  ;;  %v3530_v59 = vld [vmem:[%s5723_s29 + $0x60] sm:$0xff] }
0x1019   : > { %v4125_v60 = vpop.eup %4124 }
0x101a   : > { %v2146_v61 = vmul.f32 %v4125_v60, %v4117_v48  ;;  %v4127_v62 = vpop.eup %4126  ;;  %v3518_v48 = vld [vmem:[#allocation15 + $0x1] ss:$0 sm:$0xff] }
0x101b   : > { %v2316_v63 = vpop.permute.xlu0 %2315  ;;  %v2314_v0 = vmul.f32 %v4127_v62, %v4119_v49  ;;  %v2660_v5 = vpop.permute.xlu1 %2659  ;;  %v3531_v60 = vld [vmem:[%s5723_s29 + $0x68] sm:$0xff]  ;;  %v3532_v62 = vld [vmem:[%s5723_s29 + $0x70] sm:$0xff] }
0x101c   : > { %3744 = vmatmul.mubr.msk.f32.vlgmr.msra.gmra.mrb[16].mxu1 %vm962_vm3, %v2146_v61  ;;  %v3894_v61 = vpack.c.bf16 %v3531_v60, %v3530_v59 }
0x101d   : > { %3752 = vmatpush3.msra.mxu1 %v2316_v63  ;;  %3753 = vmatprep.mubr.msk.f32.mxu1 %vm4620_vm1, %v4621_v13  ;;  %v3533_v63 = vld [vmem:[%s5723_s29 + $0x78] sm:$0xff] }
0x101e   : > { %3761 = vmatprep.subr.mxu1 %v4621_v13  ;;  %v4129_v2 = vpop.eup %4128 }
0x101f   : > { %v2486_v23 = vmul.f32 %v4129_v2, %v4121_v52 }
0x1020   : > { %3754 = vmatmul.mubr.msk.f32.vlgmr.msra.gmra.mrb[18].mxu1 %vm962_vm3, %v2314_v0  ;;  %v3897_v0 = vpack.c.bf16 %v3533_v63, %v3532_v62 }
0x1021   : > { %3762 = vmatpush3.msra.mxu1 %v2488_v1  ;;  %3763 = vmatprep.mubr.msk.f32.mxu1 %vm4620_vm1, %v4621_v13  ;;  %v3524_v1 = vld [vmem:[#allocation18 + $0x1] ss:$0 sm:$0xff] }
0x1022   : > { %3771 = vmatprep.subr.mxu1 %v4621_v13  ;;  %v4131_v4 = vpop.eup %4130 }
0x1023   : > { %v2658_v6 = vmul.f32 %v4131_v4, %v4123_v54  ;;  %v3527_v54 = vld [vmem:[%s5723_s29 + $0x48] sm:$0xff] }
0x1024   : > { %3764 = vmatmul.mubr.msk.f32.vlgmr.msra.gmra.mrb[20].mxu1 %vm962_vm3, %v2486_v23  ;;  %v3888_v55 = vpack.c.bf16 %v3527_v54, %v3526_v53 }
0x1025   : > { %3772 = vmatpush3.msra.mxu1 %v2660_v5  ;;  %3773 = vmatprep.mubr.msk.f32.mxu1 %vm4620_vm1, %v4621_v13 }
0x1026   : > { %3881 = vmatprep.subr.bf16.mxu1 %v4619_v10 }
0x1028   : > { %3774 = vmatmul.mubr.msk.f32.vlgmr.msra.gmra.mrb[22].mxu1 %vm962_vm3, %v2658_v6 }
0x1029   : > { %3795 = vmatprep.mubr.msk.f32.mxu1 %vm4620_vm1, %v4621_v13  ;;  %3883 = vmatpush3.bf16.msra.mxu1 %v3882_v41 }
0x102a   : > { %3884 = vmatprep.subr.bf16.mxu1 %v4619_v10 }
0x10ef   : > { %v2219_v9 = vpop.f32.mrb[16].mxu1 }
0x10f0   : > { %2223 = vst.msk [vmem:[#allocation3] sm:$0xff] %vm962_vm3, %v2219_v9  ;;  %v3745_v15 = vpop.f32.mrb[17].mxu1 }
0x10f3   : > { %v2387_v17 = vpop.f32.mrb[18].mxu1 }
0x10f4   : > { %2392 = vrot.lane.b32.xlu0 %v2387_v17, %s5735_s7  ;;  %v3755_v18 = vpop.f32.mrb[19].mxu1  ;;  %s3236_s7 = scalar_lea.sflag [#allocation6], %s5137_s6 }
0x10f7   : > { %v2559_v19 = vpop.f32.mrb[20].mxu1 }
0x10f8   : > { %2564 = vrot.lane.b32.xlu1 %v2559_v19, %s5736_s30  ;;  %v3765_v20 = vpop.f32.mrb[21].mxu1  ;;  %s4508_s30 = scalar_lea.vmem %s5567_s10, 16 }
0x10f9   : > { %p4509_p3 = scmp.ne.s32.totalorder %s5567_s10, %s4508_s30 }
0x10fb   : > { %v2731_v21 = vpop.f32.mrb[22].mxu1  ;;  %p4510_p7 = pnand %p4509_p3, %p5742_p8 }
0x10fc   : > { %2736 = vrot.lane.b32.xlu0 %v2731_v21, %s5737_s0  ;;  %v3775_v22 = vpop.f32.mrb[23].mxu1  ;;  %s5738_s0 = sld [smem:[#allocation49_spill]] }
0x10fd   : > { %p4511_p12 = pneg %p4510_p7 }
0x1166   : > { %v2393_v24 = vpop.permute.xlu0 %2392 }
0x1167   : > { %2395 = vst.msk [vmem:[#allocation3] sm:$0xff] %vm1296_vm4, %v2393_v24 }
0x116a   : > { %v2565_v25 = vpop.permute.xlu1 %2564 }
0x116b   : > { %2567 = vst.msk [vmem:[#allocation3] sm:$0xff] %vm1469_vm5, %v2565_v25 }
0x116e   : > { %v2737_v26 = vpop.permute.xlu0 %2736 }
0x116f   : > { %2739 = vst.msk [vmem:[#allocation3] sm:$0xff] %vm1642_vm6, %v2737_v26 }
0x1176   : > { %v2740_v27 = vld [vmem:[#allocation3] sm:$0xff] }
0x1177   : > { %3785 = vmatmul.mubr.msk.f32.vlgmr.msra.gmra.mrb[18].mxu0 %vm834_vm0, %v2740_v27 }
0x1178   : > { %3814 = vmatprep.mubr.msk.f32.mxu0 %vm4620_vm1, %v4621_v13  ;;  %3889 = vmatpush3.bf16.msra.mxu0 %v3888_v55 }
0x1179   : > { %3890 = vmatprep.subr.bf16.mxu0 %v4619_v10 }
0x117c   : > { %3892 = vmatpush3.bf16.msra.mxu0 %v3891_v58 }
0x117d   : > { %3893 = vmatprep.subr.bf16.mxu0 %v4619_v10 }
0x1180   : > { %3895 = vmatpush3.bf16.msra.mxu0 %v3894_v61 }
0x1181   : > { %3896 = vmatprep.subr.bf16.mxu0 %v4619_v10 }
0x1184   : > { %3898 = vmatpush3.bf16.msra.mxu0 %v3897_v0 }
0x124a   : > { %v2823_v28 = vpop.f32.mrb[18].mxu0 }
0x124b   : > { %v2824_v30 = vadd.f32 %v3516_v29, %v2823_v28  ;;  %v3786_v31 = vpop.f32.mrb[19].mxu0  ;;  %v3076_v29 = vld [vmem:[%s5738_s0] sm:$0xff]  ;;  %v3077_v28 = vld [vmem:[%s5738_s0 + $0x8] sm:$0xff] }
0x124c   : > { %v3078_v31 = vld [vmem:[%s5738_s0 + $0x10] sm:$0xff] }
0x124d   : > { %v2827_v32 = vadd.f32 %v2824_v30, %v5372_v3  ;;  %v3522_v3 = vld [vmem:[%s5722_s21 + $0x30] sm:$0xff]  ;;  %v3900_v30 = vpack.c.bf16 %v3077_v28, %v3076_v29 }
0x124e   : > { %v3885_v44 = vpack.c.bf16 %v3523_v43, %v3522_v3  ;;  %v3155_v43 = vld [vmem:[%s5739_s3] sm:$0xff] }
0x124f   : > { %v2832_v33 = vsel %vm834_vm0, %v2827_v32, 0.0 }
0x1250   : > { %2833 = vadd.xlane.f32.xlu1 %v2832_v33  ;;  %3886 = vmatpush3.bf16.msra.mxu1 %v3885_v44  ;;  %v3156_v44 = vld [vmem:[%s5739_s3 + $0x8] sm:$0xff] }
0x1251   : > { %3899 = vmatprep.subr.bf16.mxu1 %v4619_v10 }
0x12dd   : > { %v2834_v34 = vpop.xlane.xlu1 %2833 }
0x12de   : > { %v2835_v35 = vmul.f32 0.03125, %v2834_v34 }
0x12e0   : > { %v2836_v36 = vsub.f32 %v2827_v32, %v2835_v35  ;;  %v3079_v32 = vld [vmem:[%s5738_s0 + $0x18] sm:$0xff]  ;;  %s3540_s0 = sshll.u32 %s5707_s27, 4  ;;  %s4636_s27 = smov [#allocation25]  }
0x12e1   : > { %v3903_v33 = vpack.c.bf16 %v3079_v32, %v3078_v31 }
0x12e2   : > { %v2837_v37 = vmul.f32 %v2836_v36, %v2836_v36 }
0x12e4   : > { %v2838_v38 = vsel %vm834_vm0, %v2837_v37, 0.0 }
0x12e5   : > { %2839 = vadd.xlane.f32.xlu0 %v2838_v38  ;;  %v3536_v38 = vld [vmem:[#allocation21 + $0x1] ss:$0 sm:$0xff] }
0x1372   : > { %v2840_v42 = vpop.xlane.xlu0 %2839 }
0x1373   : > { %v2841_v45 = vmul.f32 0.03125, %v2840_v42  ;;  %v3157_v42 = vld [vmem:[%s5739_s3 + $0x10] sm:$0xff] }
0x1375   : > { %v2842_v46 = vadd.f32 1e-12, %v2841_v45  ;;  %v3906_v45 = vpack.c.bf16 %v3156_v44, %v3155_v43 }
0x1377   : > { %4132 = vrsqrt.f32 %v2842_v46  ;;  %v3158_v46 = vld [vmem:[%s5739_s3 + $0x18] sm:$0xff]  ;;  %s5741_s3 = sld [smem:[#allocation52_spill]] }
0x137d   : > { %s5565_s8 = scalar_lea.hbm %s5741_s3, %s3540_s0 }
0x1381   : > { %v4133_v47 = vpop.eup %4132 }
0x1382   : > { %v2844_v49 = vmul.f32 %v4133_v47, %v2836_v36  ;;  %v3080_v47 = vld [vmem:[#allocation24] sm:$0x1] }
0x1384   : > { %v2851_v51 = vmul.f32 %v3518_v48, %v2844_v49 }
0x1386   : > { %v2858_v52 = vadd.f32 %v3519_v50, %v2851_v51 }
0x1388   : > { %3796 = vmatmul.mubr.msk.f32.vlgmr.msra.gmra.mrb[24].mxu1 %vm834_vm0, %v2858_v52 }
0x1389   : > { %3825 = vmatprep.mubr.msk.f32.mxu1 %vm4620_vm1, %v4621_v13  ;;  %3901 = vmatpush3.bf16.msra.mxu1 %v3900_v30 }
0x138a   : > { %3902 = vmatprep.subr.bf16.mxu1 %v4619_v10 }
0x138d   : > { %3904 = vmatpush3.bf16.msra.mxu1 %v3903_v33 }
0x138e   : > { %3905 = vmatprep.subr.bf16.mxu1 %v4619_v10 }
0x145b   : > { %v2941_v2 = vpop.f32.mrb[24].mxu1 }
0x145c   : > { %v2942_v23 = vadd.f32 %v3524_v1, %v2941_v2  ;;  %v3797_v4 = vpop.f32.mrb[25].mxu1 }
0x145e   : > { %v2946_v5 = vmul.f32 0.044715, %v2942_v23  ;;  %v2945_v12 = vmul.f32 0.5, %v2942_v23 }
0x1460   : > { %v2947_v6 = vmul.f32 %v2946_v5, %v2942_v23 }
0x1462   : > { %v2948_v7 = vmul.f32 %v2947_v6, %v2942_v23 }
0x1464   : > { %v2949_v8 = vadd.f32 %v2948_v7, %v2942_v23 }
0x1466   : > { %v2950_v9 = vmul.f32 0.7978846, %v2949_v8 }
0x1468   : > { %4134 = vtanh.f32 %v2950_v9 }
0x1472   : > { %v4135_v11 = vpop.eup %4134 }
0x1473   : > { %v2952_v14 = vadd.f32 1.0, %v4135_v11 }
0x1475   : > { %v2953_v15 = vmul.f32 %v2952_v14, %v2945_v12 }
0x1477   : > { %3815 = vmatmul.mubr.msk.f32.vlgmr.msra.gmra.mrb[20].mxu0 %vm1867_vm7, %v2953_v15 }
0x154a   : > { %v3040_v17 = vpop.f32.mrb[20].mxu0 }
0x154b   : > { %v3041_v18 = vadd.f32 %v3534_v16, %v3040_v17  ;;  %v3816_v19 = vpop.f32.mrb[21].mxu0 }
0x154d   : > { %v3044_v20 = vadd.f32 %v3041_v18, %v2858_v52  ;;  %v3159_v52 = vld [vmem:[%s5740_s18] sm:$0x1]  ;;  %s4512_s18 = sshll.u32 %s4636_s27, 4  ;;  %s4513_s18 = int_to_ptr.vmem [resolvable:$false] %s4512_s18 }
0x154e   : > { %s4514_s9 = scalar_lea.vmem %s4513_s18, 32  ;;  %p4515_p10 = scmp.lt.s32.totalorder %s5567_s10, %s4513_s18 }
0x154f   : > { %v3049_v21 = vsel %vm834_vm0, %v3044_v20, 0.0  ;;  %p4516_p4 = scmp.lt.s32.totalorder %s4514_s9, %s4508_s30 }
0x1550   : > { %3050 = vadd.xlane.f32.xlu0 %v3049_v21 }
0x1551   : > { %p4517_p1 = por %p4516_p4, %p4515_p10 }
0x1553   : > { %p4518_p13 = pnand %p4517_p1, %p4511_p12 }
0x15dd   : > { %v3051_v22 = vpop.xlane.xlu0 %3050 }
0x15de   : > { %v3052_v24 = vmul.f32 0.03125, %v3051_v22 }
0x15e0   : > { %v3053_v25 = vsub.f32 %v3044_v20, %v3052_v24 }
0x15e2   : > { %v3054_v26 = vmul.f32 %v3053_v25, %v3053_v25 }
0x15e4   : > { %v3055_v27 = vsel %vm834_vm0, %v3054_v26, 0.0 }
0x15e5   : > { %3056 = vadd.xlane.f32.xlu1 %v3055_v27 }
0x1672   : > { %v3057_v34 = vpop.xlane.xlu1 %3056 }
0x1673   : > { %v3058_v35 = vmul.f32 0.03125, %v3057_v34 }
0x1675   : > { %v3059_v36 = vadd.f32 1e-12, %v3058_v35 }
0x1677   : > { %4136 = vrsqrt.f32 %v3059_v36 }
0x1681   : > { %v4137_v37 = vpop.eup %4136 }
0x1682   : > { %v3061_v39 = vmul.f32 %v4137_v37, %v3053_v25 }
0x1684   : > { %v3068_v41 = vmul.f32 %v3536_v38, %v3061_v39 }
0x1686   : > { %v3075_v3 = vadd.f32 %v3537_v40, %v3068_v41 }
0x1688   : > { %3826 = vmatmul.mubr.msk.f32.vlgmr.msra.gmra.mrb[26].mxu1 %vm834_vm0, %v3075_v3 }
0x1689   : > { %3836 = vmatprep.mubr.msk.f32.mxu1 %vm4620_vm1, %v4621_v13  ;;  %3907 = vmatpush3.bf16.msra.mxu1 %v3906_v45  ;;  %v3909_v13 = vpack.c.bf16 %v3158_v46, %v3157_v42 }
0x168a   : > { %3908 = vmatprep.subr.bf16.mxu1 %v4619_v10 }
0x168d   : > { %3910 = vmatpush3.bf16.msra.mxu1 %v3909_v13 }
0x175b   : > { %v3150_v48 = vpop.f32.mrb[26].mxu1 }
0x175c   : > { %v3151_v49 = vadd.f32 %v3150_v48, %v3080_v47  ;;  %v3827_v50 = vpop.f32.mrb[27].mxu1 }
0x175e   : > { %4138 = vtanh.f32 %v3151_v49 }
0x1768   : > { %v4139_v51 = vpop.eup %4138 }
0x1769   : > { %3837 = vmatmul.mubr.msk.f32.vlgmr.msra.gmra.mrb[28].mxu1 %vm834_vm0, %v4139_v51 }
0x183c   : > { %v3229_v53 = vpop.f32.mrb[28].mxu1 }
0x183d   : > { %v3230_v10 = vadd.f32 %v3229_v53, %v3159_v52  ;;  %v3838_v54 = vpop.f32.mrb[29].mxu1 }
0x183f   : > { %3234 = vst.msk [vmem:[%s830_s12] sm:$0x1] %vm3233_vm8, %v3230_v10 }
0x1840   : > { %4521 = shalt.err (!%p4518_p13)
}
0x1841   : > { %s4522_s6 = scalar_lea.hbm %s5565_s8, 16  ;;  %s4526_s5 = scalar_lea.hbm %s5741_s3, 32 }
0x1842   : > { %p4523_p0 = scmp.ne.s32.totalorder %s5565_s8, %s4522_s6  ;;  %p4527_p11 = scmp.lt.u32.totalorder %s5565_s8, %s5741_s3 }
0x1843   : > { %p4528_p5 = scmp.lt.u32.totalorder %s4526_s5, %s4522_s6  ;;  %p4530_p3 = scmp.lt.u32.totalorder %s4522_s6, %s5565_s8 }
0x1844   : > { %p4524_p2 = pnand %p4523_p0, %p5742_p8 }
0x1845   : > { %p4529_p9 = por %p4528_p5, %p4527_p11 }
0x1846   : > { %p4525_p6 = pneg %p4524_p2 }
0x1847   : > { %p4531_p7 = por %p4530_p3, %p4529_p9 }
0x1849   : > { %p4532_p12 = pnand %p4531_p7, %p4525_p6 }
0x184b   : > { %4535 = shalt.err (!%p4532_p12)
}
0x184c   : > { %3959 = dma.vmem_to_hbm [thread:$0]  (%p5742_p8), %s5567_s10, 16, %s5565_s8, %s3236_s7  }
0x184d PF: > { %s3260_s9 = sand.u32 1, %s4590_s1   ;;  %p5743_p10 = scmp.ne.s32.totalorder %s5699_s28, 0 }
0x184e   : > { %p5744_p4 = scmp.ge.s32.totalorder %s4602_s24, 2  ;;  %s3261_s30 = scalar_lea.sflag [#allocation6], %s3260_s9 }
0x1850   : > { %p4003_p1 = pnand %p5744_p4, %p5743_p10 }
0x1852   : > { %4585 = dma.done.wait (!%p4003_p1), %s3261_s30, 16  }
0x1853   : > { %4587 = vsyncadd (!%p4003_p1), %s3261_s30, 4294967280  ;;  %p41_p13 = scmp.ge.s32.totalorder %s5034_s4, 4   ;;  %s5745_s1 = smov %s4594_s22 }
0x1854   : > { %s5746_s22 = smov %s4598_s23  ;;  %s5747_s23 = smov %s5046_s19 }
0x1855   : > { %s5748_s24 = smov %s5034_s4  ;;  %43 = sbr.rel (!%p41_p13) target bundleno = 29 (0x1d), region = 214 }
0x185c   :  { %3265 = vsyncpa [#allocation5], 1 }
0x185d   :  { %3267 = vsyncpa [#allocation5 + $0x1], 1 }
0x185e   :  { %3268 = vsyncpa [#allocation8], 1 }
0x185f   :  { %3270 = vsyncpa [#allocation8 + $0x1], 1 }
0x1860   :  { %3271 = vsyncpa [#allocation11], 1 }
0x1861   :  { %3272 = vsyncpa [#allocation14], 1 }
0x1862   :  { %3273 = vsyncpa [#allocation17], 1 }
0x1863   :  { %3274 = vsyncpa [#allocation20], 1 }
0x1864   :  { %3275 = vsyncpa [#allocation23], 1 }
0x1865   :  { %3276 = vsyncpa [#allocation6], 1 }
0x1866   :  { %3278 = vsyncpa [#allocation6 + $0x1], 1 }

</bundles_post_ra>
